<compile_context>
chip_gen: v7x
topology: tpu7x:2x2x1
jax: 0.10.0
libtpu: 0.0.40
codegen_flags: <defaults>
</compile_context>

<pallas_src>
import jax
import jax.numpy as jnp
from jax import lax
from jax.experimental import pallas as pl
from jax.experimental.pallas import tpu as pltpu

# --------------------------- module-consistent sizes ---------------------------
B = 2
EHR_VOCAB = 12
PRS_VOCAB = 10
L_EHR = 16            # max_seq_len_ehr
L_PRS = 8             # max_seq_len_prs
EHR_EMB = 16          # ehr_emb_size
PRS_EMB = 64          # prs_emb_size (must be 64)
KSZ = 3               # kernel_size (odd)
PAD = (KSZ - 1) // 2
CH1 = EHR_EMB // 2    # ch_l1
FEAT_EHR = L_EHR      # odd kernel + same padding => length preserving
KC = KSZ * EHR_EMB    # im2col rows

# Linear layer dims stored as (in, out); iteration order defines packing layout.
LIN_DIMS = {
    "1": (CH1 * FEAT_EHR, 64), "3": (64, 32),
    "7": (32, 64), "8": (64, EHR_VOCAB * L_EHR),
    "9": (64, 64), "10": (64, 32),
    "11": (32, 64), "13": (64, PRS_VOCAB * L_PRS),
    "15": (32, 32), "16": (32, 16),
}
K64_NAMES = [n for n, (di, _) in LIN_DIMS.items() if di == 64]   # 3,8,9,10,13
K32_NAMES = [n for n, (di, _) in LIN_DIMS.items() if di == 32]   # 7,11,15,16
BIAS_ORDER = list(LIN_DIMS.keys())


def _offsets(names):
    offs, cur = {}, 0
    for n in names:
        dout = LIN_DIMS[n][1]
        offs[n] = (cur, dout)
        cur += dout
    return offs, cur


W64_OFF, W64_TOT = _offsets(K64_NAMES)     # (64, 400)
W32_OFF, W32_TOT = _offsets(K32_NAMES)     # (32, 176)
BIAS_OFF, BIAS_TOT = _offsets(BIAS_ORDER)  # (1, 640)

# output slab layout: [oe | op | enc_ehr | enc_prs | zero pad]
OE_W = EHR_VOCAB * L_EHR        # 192
OP_W = PRS_VOCAB * L_PRS        # 80
ENC_W = 16
OUT_USED = OE_W + OP_W + 2 * ENC_W   # 304
OUT_W = 384                          # pad to 3*128 lanes -> unmasked store


# ================================ fused kernel ================================
def _softplus(x):
    return jnp.maximum(x, 0.0) + jnp.log(1.0 + jnp.exp(-jnp.abs(x)))


def _shift_lanes(a, d):
    """a[:, l] -> a[:, l + d], zero fill outside [0, L). (zero == -inf here: a >= 0)"""
    c, l = a.shape
    z = jnp.zeros((c, abs(d)), a.dtype)
    if d > 0:
        return jnp.concatenate([a[:, d:], z], axis=1)
    return jnp.concatenate([z, a[:, :l + d]], axis=1)


def _fused_kernel(x_ref, y_ref, etabT_ref, ptab_ref, wconv_ref, bconv_ref,
                  w1_ref, wk64_ref, wk32_ref, bias_ref, out_ref):
    f32 = jnp.float32

    def bias(name):
        off, w = BIAS_OFF[name]
        return bias_ref[:, off:off + w]

    def w64(name):
        off, w = W64_OFF[name]
        return wk64_ref[:, off:off + w]

    def w32(name):
        off, w = W32_OFF[name]
        return wk32_ref[:, off:off + w]

    def lin(x, w, b):
        return jnp.dot(x, w, preferred_element_type=f32) + b

    # ---------- EHR branch: embedding -> conv1d -> relu -> max_pool1d ----------
    # Embedding lookup as one-hot @ table (padding_idx=0 row is zero in the table).
    xv = x_ref[...]                                                   # (B, L_EHR) i32
    viota = lax.broadcasted_iota(jnp.int32, (EHR_VOCAB, L_EHR), 0)
    oh_all = jnp.concatenate(
        [(viota == xv[b:b + 1, :]).astype(f32) for b in range(B)], axis=1)     # (V, B*L)
    emb_all = jnp.dot(etabT_ref[...], oh_all, preferred_element_type=f32)      # (E, B*L)

    # im2col, padded per batch so windows never cross the batch boundary.
    zpad = jnp.zeros((EHR_EMB, PAD), f32)
    xcols = []
    for b in range(B):
        emb_b = emb_all[:, b * L_EHR:(b + 1) * L_EHR]
        emb_p = jnp.concatenate([zpad, emb_b, zpad], axis=1)          # (E, L+2*PAD)
        xcols.append(jnp.concatenate(
            [emb_p[:, dk:dk + L_EHR] for dk in range(KSZ)], axis=0))  # (KSZ*E, L)
    xcol_all = jnp.concatenate(xcols, axis=1)                         # (KSZ*E, B*L)

    conv = jnp.dot(wconv_ref[...], xcol_all,
                   preferred_element_type=f32) + bconv_ref[...]       # (CH1, B*L)
    y_all = jnp.maximum(conv, 0.0)                                    # ReLU

    # max_pool1d(k, stride=1, pad=PAD) in registers; zero pad == -inf pad (y >= 0).
    xe_rows = []
    for b in range(B):
        yb = y_all[:, b * L_EHR:(b + 1) * L_EHR]                      # (CH1, L)
        pooled = yb
        for d in range(1, PAD + 1):
            pooled = jnp.maximum(pooled, _shift_lanes(yb, d))
            pooled = jnp.maximum(pooled, _shift_lanes(yb, -d))
        # torch .view on contiguous (B, C, L): flatten order c*L + l
        xe_rows.append(jnp.concatenate(
            [pooled[c:c + 1, :] for c in range(CH1)], axis=1))        # (1, CH1*L)
    xe = jnp.concatenate(xe_rows, axis=0)                             # (B, 128)

    # ---------- PRS branch: mean(embedding(y), axis=1) as counts @ table ----------
    yv = y_ref[...]                                                   # (B, L_PRS) i32
    piota = lax.broadcasted_iota(jnp.int32, (B, PRS_VOCAB), 1)
    counts = jnp.zeros((B, PRS_VOCAB), f32)
    for l in range(L_PRS):
        counts = counts + (piota == yv[:, l:l + 1]).astype(f32)
    pm = jnp.dot(counts, ptab_ref[...],
                 preferred_element_type=f32) * (1.0 / L_PRS)          # (B, 64)

    # ------------------------------- MLP head -------------------------------
    # TODO(synk): F.dropout (training-mode in the original) implemented as identity.
    h = jnp.maximum(lin(xe, w1_ref[...], bias("1")), 0.0)             # linear1 + relu
    e_ehr = lin(h, w64("3"), bias("3"))                               # (B, 32)

    p = jnp.maximum(lin(pm, w64("9"), bias("9")), 0.0)                # linear9 + relu
    e_prs = lin(p, w64("10"), bias("10"))                             # (B, 32)

    # encoder applied ONCE to the concatenated batch (torch.cat(dim=0))
    cat = jnp.concatenate([e_ehr, e_prs], axis=0)                     # (2B, 32)
    enc = lin(jnp.maximum(lin(cat, w32("15"), bias("15")), 0.0),
              w32("16"), bias("16"))                                  # (2B, 16)

    # decoders
    oe = lin(_softplus(lin(e_ehr, w32("7"), bias("7"))),
             w64("8"), bias("8"))                                     # (B, 192)
    op = lin(_softplus(lin(e_prs, w32("11"), bias("11"))),
             w64("13"), bias("13"))                                   # (B, 80)

    out_ref[...] = jnp.concatenate(
        [oe, op, enc[:B], enc[B:], jnp.zeros((B, OUT_W - OUT_USED), f32)], axis=1)


# ============================= wrapper (single call) =============================
def ehr_encoding_forward(x_idx, y_idx, params):
    vmem = pl.BlockSpec(memory_space=pltpu.MemorySpace.VMEM)
    out = pl.pallas_call(
        _fused_kernel,
        out_shape=jax.ShapeDtypeStruct((B, OUT_W), jnp.float32),
        in_specs=[vmem] * 10,
        out_specs=vmem,
    )(x_idx, y_idx,
      params["etabT"], params["prs_table"],
      params["wconv_flat"], params["bconv_col"],
      params["W1"], params["Wk64"], params["Wk32"], params["bias_pack"])

    out_ehr = out[:, :OE_W].reshape(B, EHR_VOCAB, L_EHR)
    out_prs = out[:, OE_W:OE_W + OP_W].reshape(B, PRS_VOCAB, L_PRS)
    me = out[:, OE_W + OP_W:OE_W + OP_W + ENC_W]
    mp = out[:, OE_W + OP_W + ENC_W:OUT_USED]
    encoded_vec = jnp.concatenate([me, mp], axis=0)                   # (2B, 16)
    return out_ehr, out_prs, encoded_vec


# ============================ parameter construction ============================
def make_params(key):
    ks = jax.random.split(key, 32)
    s = 0.1

    def n(k, shape, scale=s):
        return (scale * jax.random.normal(k, shape)).astype(jnp.float32)

    p = {}
    p["ehr_table"] = n(ks[0], (EHR_VOCAB, EHR_EMB)).at[0].set(0.0)    # padding_idx=0
    p["prs_table"] = n(ks[1], (PRS_VOCAB, PRS_EMB)).at[0].set(0.0)    # padding_idx=0
    p["w_conv"] = n(ks[2], (CH1, EHR_EMB, KSZ))                       # torch (out,in,k)
    p["b_conv"] = n(ks[3], (CH1,), 0.05)

    for i, (name, (din, dout)) in enumerate(LIN_DIMS.items()):
        p["W" + name] = n(ks[4 + 2 * i], (din, dout))                 # (in, out)
        p["b" + name] = n(ks[5 + 2 * i], (1, dout), 0.05)

    # one-time packing of kernel operands (no per-call XLA glue)
    p["etabT"] = jnp.transpose(p["ehr_table"])                        # (E, V)
    p["wconv_flat"] = jnp.transpose(p["w_conv"], (0, 2, 1)).reshape(CH1, KC)
    p["bconv_col"] = p["b_conv"].reshape(CH1, 1)
    p["Wk64"] = jnp.concatenate([p["W" + nm] for nm in K64_NAMES], axis=1)   # (64,400)
    p["Wk32"] = jnp.concatenate([p["W" + nm] for nm in K32_NAMES], axis=1)   # (32,176)
    p["bias_pack"] = jnp.concatenate([p["b" + nm] for nm in BIAS_ORDER], axis=1)  # (1,640)
    return p


# ============================ pure-JAX reference check ==========================
def reference_forward(x_idx, y_idx, p):
    emb = jnp.transpose(p["ehr_table"][x_idx], (0, 2, 1))
    xpad = jnp.pad(emb, ((0, 0), (0, 0), (PAD, PAD)))
    conv = jnp.zeros((B, CH1, L_EHR), jnp.float32)
    for dk in range(KSZ):
        conv = conv + jnp.einsum("oc,bcl->bol", p["w_conv"][:, :, dk],
                                 xpad[:, :, dk:dk + L_EHR])
    y = jnp.maximum(conv + p["b_conv"][None, :, None], 0.0)
    ypad = jnp.pad(y, ((0, 0), (0, 0), (PAD, PAD)))
    pooled = ypad[:, :, 0:L_EHR]
    for d in range(1, KSZ):
        pooled = jnp.maximum(pooled, ypad[:, :, d:d + L_EHR])
    xe = pooled.reshape(B, -1)
    pm = jnp.mean(p["prs_table"][y_idx], axis=1)

    def lin(x, name):
        return x @ p["W" + name] + p["b" + name]

    h = jnp.maximum(lin(xe, "1"), 0.0)
    e_ehr = lin(h, "3")
    q = jnp.maximum(lin(pm, "9"), 0.0)
    e_prs = lin(q, "10")
    cat = jnp.concatenate([e_ehr, e_prs], axis=0)
    enc = lin(jnp.maximum(lin(cat, "15"), 0.0), "16")
    oe = lin(jax.nn.softplus(lin(e_ehr, "7")), "8").reshape(B, EHR_VOCAB, L_EHR)
    op = lin(jax.nn.softplus(lin(e_prs, "11")), "13").reshape(B, PRS_VOCAB, L_PRS)
    return oe, op, enc


# ====================================== main ====================================
if __name__ == "__main__":
    key = jax.random.PRNGKey(0)
    kx, ky, kp = jax.random.split(key, 3)
    x = jax.random.randint(kx, (B, L_EHR), 0, EHR_VOCAB, dtype=jnp.int32)
    y = jax.random.randint(ky, (B, L_PRS), 0, PRS_VOCAB, dtype=jnp.int32)
    params = make_params(kp)

    out_ehr, out_prs, encoded_vec = jax.block_until_ready(
        ehr_encoding_forward(x, y, params))

    assert out_ehr.shape == (B, EHR_VOCAB, L_EHR)
    assert out_prs.shape == (B, PRS_VOCAB, L_PRS)
    assert encoded_vec.shape == (2 * B, 16)

    r_ehr, r_prs, r_enc = reference_forward(x, y, params)
    ok = (jnp.allclose(out_ehr, r_ehr, rtol=2e-2, atol=2e-2)
          and jnp.allclose(out_prs, r_prs, rtol=2e-2, atol=2e-2)
          and jnp.allclose(encoded_vec, r_enc, rtol=2e-2, atol=2e-2))
    assert bool(ok), "Pallas output does not match pure-JAX reference"

    print("KERNEL_OK")
</pallas_src>

<mosaic_0001>
module attributes {stable_mosaic.version = 11 : i64} {
  func.func @_fused_kernel(%arg0: memref<2x16xi32, #tpu.memory_space<vmem>>, %arg1: memref<2x8xi32, #tpu.memory_space<vmem>>, %arg2: memref<16x12xf32, #tpu.memory_space<vmem>>, %arg3: memref<10x64xf32, #tpu.memory_space<vmem>>, %arg4: memref<8x48xf32, #tpu.memory_space<vmem>>, %arg5: memref<8x1xf32, #tpu.memory_space<vmem>>, %arg6: memref<128x64xf32, #tpu.memory_space<vmem>>, %arg7: memref<64x400xf32, #tpu.memory_space<vmem>>, %arg8: memref<32x176xf32, #tpu.memory_space<vmem>>, %arg9: memref<1x640xf32, #tpu.memory_space<vmem>>, %arg10: memref<2x384xf32, #tpu.memory_space<vmem>>) attributes {dimension_semantics = [], scalar_prefetch = 0 : i64, scratch_operands = 0 : i64, tpu.core_type = #tpu.core_type<tc>} {
    %c0 = arith.constant 0 : index
    %c0_0 = arith.constant 0 : index
    %0 = vector.load %arg0[%c0, %c0_0] : memref<2x16xi32, #tpu.memory_space<vmem>>, vector<2x16xi32>
    %1 = tpu.iota {dimensions = array<i32: 0>} : vector<12x16xi32>
    %2 = vector.extract_strided_slice %0 {offsets = [0, 0], sizes = [1, 16], strides = [1, 1]} : vector<2x16xi32> to vector<1x16xi32>
    %3 = vector.broadcast %2 : vector<1x16xi32> to vector<12x16xi32>
    %4 = arith.cmpi eq, %1, %3 : vector<12x16xi32>
    %5 = arith.extui %4 : vector<12x16xi1> to vector<12x16xi32>
    %6 = arith.sitofp %5 : vector<12x16xi32> to vector<12x16xf32>
    %7 = vector.extract_strided_slice %0 {offsets = [1, 0], sizes = [1, 16], strides = [1, 1]} : vector<2x16xi32> to vector<1x16xi32>
    %8 = vector.broadcast %7 : vector<1x16xi32> to vector<12x16xi32>
    %9 = arith.cmpi eq, %1, %8 : vector<12x16xi32>
    %10 = arith.extui %9 : vector<12x16xi1> to vector<12x16xi32>
    %11 = arith.sitofp %10 : vector<12x16xi32> to vector<12x16xf32>
    %12 = tpu.concatenate %6, %11 in 1 : vector<12x16xf32>, vector<12x16xf32> -> vector<12x32xf32>
    %c0_1 = arith.constant 0 : index
    %c0_2 = arith.constant 0 : index
    %13 = vector.load %arg2[%c0_1, %c0_2] : memref<16x12xf32, #tpu.memory_space<vmem>>, vector<16x12xf32>
    %cst = arith.constant dense<0.000000e+00> : vector<16x32xf32>
    %14 = tpu.matmul %13, %12, %cst {dimension_numbers = #tpu.dot_dimension_numbers<[1], [0], [0], [1], [0, 0, 1, 1], [], []>} : vector<16x12xf32>, vector<12x32xf32>, vector<16x32xf32> -> vector<16x32xf32>
    %cst_3 = arith.constant 0.000000e+00 : f32
    %15 = vector.broadcast %cst_3 : f32 to vector<16x1xf32>
    %16 = vector.extract_strided_slice %14 {offsets = [0, 0], sizes = [16, 16], strides = [1, 1]} : vector<16x32xf32> to vector<16x16xf32>
    %17 = tpu.concatenate %15, %16, %15 in 1 : vector<16x1xf32>, vector<16x16xf32>, vector<16x1xf32> -> vector<16x18xf32>
    %18 = vector.extract_strided_slice %17 {offsets = [0, 0], sizes = [16, 16], strides = [1, 1]} : vector<16x18xf32> to vector<16x16xf32>
    %19 = vector.extract_strided_slice %17 {offsets = [0, 1], sizes = [16, 16], strides = [1, 1]} : vector<16x18xf32> to vector<16x16xf32>
    %20 = vector.extract_strided_slice %17 {offsets = [0, 2], sizes = [16, 16], strides = [1, 1]} : vector<16x18xf32> to vector<16x16xf32>
    %21 = tpu.concatenate %18, %19, %20 in 0 : vector<16x16xf32>, vector<16x16xf32>, vector<16x16xf32> -> vector<48x16xf32>
    %22 = vector.extract_strided_slice %14 {offsets = [0, 16], sizes = [16, 16], strides = [1, 1]} : vector<16x32xf32> to vector<16x16xf32>
    %23 = tpu.concatenate %15, %22, %15 in 1 : vector<16x1xf32>, vector<16x16xf32>, vector<16x1xf32> -> vector<16x18xf32>
    %24 = vector.extract_strided_slice %23 {offsets = [0, 0], sizes = [16, 16], strides = [1, 1]} : vector<16x18xf32> to vector<16x16xf32>
    %25 = vector.extract_strided_slice %23 {offsets = [0, 1], sizes = [16, 16], strides = [1, 1]} : vector<16x18xf32> to vector<16x16xf32>
    %26 = vector.extract_strided_slice %23 {offsets = [0, 2], sizes = [16, 16], strides = [1, 1]} : vector<16x18xf32> to vector<16x16xf32>
    %27 = tpu.concatenate %24, %25, %26 in 0 : vector<16x16xf32>, vector<16x16xf32>, vector<16x16xf32> -> vector<48x16xf32>
    %28 = tpu.concatenate %21, %27 in 1 : vector<48x16xf32>, vector<48x16xf32> -> vector<48x32xf32>
    %c0_4 = arith.constant 0 : index
    %c0_5 = arith.constant 0 : index
    %29 = vector.load %arg4[%c0_4, %c0_5] : memref<8x48xf32, #tpu.memory_space<vmem>>, vector<8x48xf32>
    %cst_6 = arith.constant dense<0.000000e+00> : vector<8x32xf32>
    %30 = tpu.matmul %29, %28, %cst_6 {dimension_numbers = #tpu.dot_dimension_numbers<[1], [0], [0], [1], [0, 0, 1, 1], [], []>} : vector<8x48xf32>, vector<48x32xf32>, vector<8x32xf32> -> vector<8x32xf32>
    %c0_7 = arith.constant 0 : index
    %c0_8 = arith.constant 0 : index
    %31 = vector.load %arg5[%c0_7, %c0_8] : memref<8x1xf32, #tpu.memory_space<vmem>>, vector<8x1xf32>
    %32 = vector.broadcast %31 : vector<8x1xf32> to vector<8x32xf32>
    %33 = arith.addf %30, %32 : vector<8x32xf32>
    %cst_9 = arith.constant 0.000000e+00 : f32
    %34 = vector.broadcast %cst_9 : f32 to vector<8x32xf32>
    %35 = arith.maximumf %33, %34 : vector<8x32xf32>
    %36 = vector.extract_strided_slice %35 {offsets = [0, 0], sizes = [8, 16], strides = [1, 1]} : vector<8x32xf32> to vector<8x16xf32>
    %cst_10 = arith.constant 0.000000e+00 : f32
    %37 = vector.broadcast %cst_10 : f32 to vector<8x1xf32>
    %38 = vector.extract_strided_slice %36 {offsets = [0, 1], sizes = [8, 15], strides = [1, 1]} : vector<8x16xf32> to vector<8x15xf32>
    %39 = tpu.concatenate %38, %37 in 1 : vector<8x15xf32>, vector<8x1xf32> -> vector<8x16xf32>
    %40 = arith.maximumf %36, %39 : vector<8x16xf32>
    %cst_11 = arith.constant 0.000000e+00 : f32
    %41 = vector.broadcast %cst_11 : f32 to vector<8x1xf32>
    %42 = vector.extract_strided_slice %36 {offsets = [0, 0], sizes = [8, 15], strides = [1, 1]} : vector<8x16xf32> to vector<8x15xf32>
    %43 = tpu.concatenate %41, %42 in 1 : vector<8x1xf32>, vector<8x15xf32> -> vector<8x16xf32>
    %44 = arith.maximumf %40, %43 : vector<8x16xf32>
    %45 = vector.extract_strided_slice %44 {offsets = [0, 0], sizes = [1, 16], strides = [1, 1]} : vector<8x16xf32> to vector<1x16xf32>
    %46 = vector.extract_strided_slice %44 {offsets = [1, 0], sizes = [1, 16], strides = [1, 1]} : vector<8x16xf32> to vector<1x16xf32>
    %47 = vector.extract_strided_slice %44 {offsets = [2, 0], sizes = [1, 16], strides = [1, 1]} : vector<8x16xf32> to vector<1x16xf32>
    %48 = vector.extract_strided_slice %44 {offsets = [3, 0], sizes = [1, 16], strides = [1, 1]} : vector<8x16xf32> to vector<1x16xf32>
    %49 = vector.extract_strided_slice %44 {offsets = [4, 0], sizes = [1, 16], strides = [1, 1]} : vector<8x16xf32> to vector<1x16xf32>
    %50 = vector.extract_strided_slice %44 {offsets = [5, 0], sizes = [1, 16], strides = [1, 1]} : vector<8x16xf32> to vector<1x16xf32>
    %51 = vector.extract_strided_slice %44 {offsets = [6, 0], sizes = [1, 16], strides = [1, 1]} : vector<8x16xf32> to vector<1x16xf32>
    %52 = vector.extract_strided_slice %44 {offsets = [7, 0], sizes = [1, 16], strides = [1, 1]} : vector<8x16xf32> to vector<1x16xf32>
    %53 = tpu.concatenate %45, %46, %47, %48, %49, %50, %51, %52 in 1 : vector<1x16xf32>, vector<1x16xf32>, vector<1x16xf32>, vector<1x16xf32>, vector<1x16xf32>, vector<1x16xf32>, vector<1x16xf32>, vector<1x16xf32> -> vector<1x128xf32>
    %54 = vector.extract_strided_slice %35 {offsets = [0, 16], sizes = [8, 16], strides = [1, 1]} : vector<8x32xf32> to vector<8x16xf32>
    %cst_12 = arith.constant 0.000000e+00 : f32
    %55 = vector.broadcast %cst_12 : f32 to vector<8x1xf32>
    %56 = vector.extract_strided_slice %54 {offsets = [0, 1], sizes = [8, 15], strides = [1, 1]} : vector<8x16xf32> to vector<8x15xf32>
    %57 = tpu.concatenate %56, %55 in 1 : vector<8x15xf32>, vector<8x1xf32> -> vector<8x16xf32>
    %58 = arith.maximumf %54, %57 : vector<8x16xf32>
    %cst_13 = arith.constant 0.000000e+00 : f32
    %59 = vector.broadcast %cst_13 : f32 to vector<8x1xf32>
    %60 = vector.extract_strided_slice %54 {offsets = [0, 0], sizes = [8, 15], strides = [1, 1]} : vector<8x16xf32> to vector<8x15xf32>
    %61 = tpu.concatenate %59, %60 in 1 : vector<8x1xf32>, vector<8x15xf32> -> vector<8x16xf32>
    %62 = arith.maximumf %58, %61 : vector<8x16xf32>
    %63 = vector.extract_strided_slice %62 {offsets = [0, 0], sizes = [1, 16], strides = [1, 1]} : vector<8x16xf32> to vector<1x16xf32>
    %64 = vector.extract_strided_slice %62 {offsets = [1, 0], sizes = [1, 16], strides = [1, 1]} : vector<8x16xf32> to vector<1x16xf32>
    %65 = vector.extract_strided_slice %62 {offsets = [2, 0], sizes = [1, 16], strides = [1, 1]} : vector<8x16xf32> to vector<1x16xf32>
    %66 = vector.extract_strided_slice %62 {offsets = [3, 0], sizes = [1, 16], strides = [1, 1]} : vector<8x16xf32> to vector<1x16xf32>
    %67 = vector.extract_strided_slice %62 {offsets = [4, 0], sizes = [1, 16], strides = [1, 1]} : vector<8x16xf32> to vector<1x16xf32>
    %68 = vector.extract_strided_slice %62 {offsets = [5, 0], sizes = [1, 16], strides = [1, 1]} : vector<8x16xf32> to vector<1x16xf32>
    %69 = vector.extract_strided_slice %62 {offsets = [6, 0], sizes = [1, 16], strides = [1, 1]} : vector<8x16xf32> to vector<1x16xf32>
    %70 = vector.extract_strided_slice %62 {offsets = [7, 0], sizes = [1, 16], strides = [1, 1]} : vector<8x16xf32> to vector<1x16xf32>
    %71 = tpu.concatenate %63, %64, %65, %66, %67, %68, %69, %70 in 1 : vector<1x16xf32>, vector<1x16xf32>, vector<1x16xf32>, vector<1x16xf32>, vector<1x16xf32>, vector<1x16xf32>, vector<1x16xf32>, vector<1x16xf32> -> vector<1x128xf32>
    %72 = tpu.concatenate %53, %71 in 0 : vector<1x128xf32>, vector<1x128xf32> -> vector<2x128xf32>
    %c0_14 = arith.constant 0 : index
    %c0_15 = arith.constant 0 : index
    %73 = vector.load %arg1[%c0_14, %c0_15] : memref<2x8xi32, #tpu.memory_space<vmem>>, vector<2x8xi32>
    %74 = tpu.iota {dimensions = array<i32: 1>} : vector<2x10xi32>
    %cst_16 = arith.constant 0.000000e+00 : f32
    %75 = vector.broadcast %cst_16 : f32 to vector<2x10xf32>
    %76 = vector.extract_strided_slice %73 {offsets = [0, 0], sizes = [2, 1], strides = [1, 1]} : vector<2x8xi32> to vector<2x1xi32>
    %77 = vector.broadcast %76 : vector<2x1xi32> to vector<2x10xi32>
    %78 = arith.cmpi eq, %74, %77 : vector<2x10xi32>
    %79 = arith.extui %78 : vector<2x10xi1> to vector<2x10xi32>
    %80 = arith.sitofp %79 : vector<2x10xi32> to vector<2x10xf32>
    %81 = arith.addf %75, %80 : vector<2x10xf32>
    %82 = vector.extract_strided_slice %73 {offsets = [0, 1], sizes = [2, 1], strides = [1, 1]} : vector<2x8xi32> to vector<2x1xi32>
    %83 = vector.broadcast %82 : vector<2x1xi32> to vector<2x10xi32>
    %84 = arith.cmpi eq, %74, %83 : vector<2x10xi32>
    %85 = arith.extui %84 : vector<2x10xi1> to vector<2x10xi32>
    %86 = arith.sitofp %85 : vector<2x10xi32> to vector<2x10xf32>
    %87 = arith.addf %81, %86 : vector<2x10xf32>
    %88 = vector.extract_strided_slice %73 {offsets = [0, 2], sizes = [2, 1], strides = [1, 1]} : vector<2x8xi32> to vector<2x1xi32>
    %89 = vector.broadcast %88 : vector<2x1xi32> to vector<2x10xi32>
    %90 = arith.cmpi eq, %74, %89 : vector<2x10xi32>
    %91 = arith.extui %90 : vector<2x10xi1> to vector<2x10xi32>
    %92 = arith.sitofp %91 : vector<2x10xi32> to vector<2x10xf32>
    %93 = arith.addf %87, %92 : vector<2x10xf32>
    %94 = vector.extract_strided_slice %73 {offsets = [0, 3], sizes = [2, 1], strides = [1, 1]} : vector<2x8xi32> to vector<2x1xi32>
    %95 = vector.broadcast %94 : vector<2x1xi32> to vector<2x10xi32>
    %96 = arith.cmpi eq, %74, %95 : vector<2x10xi32>
    %97 = arith.extui %96 : vector<2x10xi1> to vector<2x10xi32>
    %98 = arith.sitofp %97 : vector<2x10xi32> to vector<2x10xf32>
    %99 = arith.addf %93, %98 : vector<2x10xf32>
    %100 = vector.extract_strided_slice %73 {offsets = [0, 4], sizes = [2, 1], strides = [1, 1]} : vector<2x8xi32> to vector<2x1xi32>
    %101 = vector.broadcast %100 : vector<2x1xi32> to vector<2x10xi32>
    %102 = arith.cmpi eq, %74, %101 : vector<2x10xi32>
    %103 = arith.extui %102 : vector<2x10xi1> to vector<2x10xi32>
    %104 = arith.sitofp %103 : vector<2x10xi32> to vector<2x10xf32>
    %105 = arith.addf %99, %104 : vector<2x10xf32>
    %106 = vector.extract_strided_slice %73 {offsets = [0, 5], sizes = [2, 1], strides = [1, 1]} : vector<2x8xi32> to vector<2x1xi32>
    %107 = vector.broadcast %106 : vector<2x1xi32> to vector<2x10xi32>
    %108 = arith.cmpi eq, %74, %107 : vector<2x10xi32>
    %109 = arith.extui %108 : vector<2x10xi1> to vector<2x10xi32>
    %110 = arith.sitofp %109 : vector<2x10xi32> to vector<2x10xf32>
    %111 = arith.addf %105, %110 : vector<2x10xf32>
    %112 = vector.extract_strided_slice %73 {offsets = [0, 6], sizes = [2, 1], strides = [1, 1]} : vector<2x8xi32> to vector<2x1xi32>
    %113 = vector.broadcast %112 : vector<2x1xi32> to vector<2x10xi32>
    %114 = arith.cmpi eq, %74, %113 : vector<2x10xi32>
    %115 = arith.extui %114 : vector<2x10xi1> to vector<2x10xi32>
    %116 = arith.sitofp %115 : vector<2x10xi32> to vector<2x10xf32>
    %117 = arith.addf %111, %116 : vector<2x10xf32>
    %118 = vector.extract_strided_slice %73 {offsets = [0, 7], sizes = [2, 1], strides = [1, 1]} : vector<2x8xi32> to vector<2x1xi32>
    %119 = vector.broadcast %118 : vector<2x1xi32> to vector<2x10xi32>
    %120 = arith.cmpi eq, %74, %119 : vector<2x10xi32>
    %121 = arith.extui %120 : vector<2x10xi1> to vector<2x10xi32>
    %122 = arith.sitofp %121 : vector<2x10xi32> to vector<2x10xf32>
    %123 = arith.addf %117, %122 : vector<2x10xf32>
    %c0_17 = arith.constant 0 : index
    %c0_18 = arith.constant 0 : index
    %124 = vector.load %arg3[%c0_17, %c0_18] : memref<10x64xf32, #tpu.memory_space<vmem>>, vector<10x64xf32>
    %cst_19 = arith.constant dense<0.000000e+00> : vector<2x64xf32>
    %125 = tpu.matmul %123, %124, %cst_19 {dimension_numbers = #tpu.dot_dimension_numbers<[1], [0], [0], [1], [0, 0, 1, 1], [], []>} : vector<2x10xf32>, vector<10x64xf32>, vector<2x64xf32> -> vector<2x64xf32>
    %cst_20 = arith.constant 1.250000e-01 : f32
    %126 = vector.broadcast %cst_20 : f32 to vector<2x64xf32>
    %127 = arith.mulf %125, %126 : vector<2x64xf32>
    %c0_21 = arith.constant 0 : index
    %c0_22 = arith.constant 0 : index
    %128 = vector.load %arg6[%c0_21, %c0_22] : memref<128x64xf32, #tpu.memory_space<vmem>>, vector<128x64xf32>
    %c0_23 = arith.constant 0 : index
    %c0_24 = arith.constant 0 : index
    %129 = vector.load %arg9[%c0_23, %c0_24] : memref<1x640xf32, #tpu.memory_space<vmem>>, vector<1x64xf32>
    %cst_25 = arith.constant dense<0.000000e+00> : vector<2x64xf32>
    %130 = tpu.matmul %72, %128, %cst_25 {dimension_numbers = #tpu.dot_dimension_numbers<[1], [0], [0], [1], [0, 0, 1, 1], [], []>} : vector<2x128xf32>, vector<128x64xf32>, vector<2x64xf32> -> vector<2x64xf32>
    %131 = vector.broadcast %129 : vector<1x64xf32> to vector<2x64xf32>
    %132 = arith.addf %130, %131 : vector<2x64xf32>
    %cst_26 = arith.constant 0.000000e+00 : f32
    %133 = vector.broadcast %cst_26 : f32 to vector<2x64xf32>
    %134 = arith.maximumf %132, %133 : vector<2x64xf32>
    %c0_27 = arith.constant 0 : index
    %c0_28 = arith.constant 0 : index
    %135 = vector.load %arg7[%c0_27, %c0_28] : memref<64x400xf32, #tpu.memory_space<vmem>>, vector<64x32xf32>
    %c0_29 = arith.constant 0 : index
    %c64 = arith.constant 64 : index
    %136 = vector.load %arg9[%c0_29, %c64] : memref<1x640xf32, #tpu.memory_space<vmem>>, vector<1x32xf32>
    %cst_30 = arith.constant dense<0.000000e+00> : vector<2x32xf32>
    %137 = tpu.matmul %134, %135, %cst_30 {dimension_numbers = #tpu.dot_dimension_numbers<[1], [0], [0], [1], [0, 0, 1, 1], [], []>} : vector<2x64xf32>, vector<64x32xf32>, vector<2x32xf32> -> vector<2x32xf32>
    %138 = vector.broadcast %136 : vector<1x32xf32> to vector<2x32xf32>
    %139 = arith.addf %137, %138 : vector<2x32xf32>
    %c0_31 = arith.constant 0 : index
    %c224 = arith.constant 224 : index
    %140 = vector.load %arg7[%c0_31, %c224] : memref<64x400xf32, #tpu.memory_space<vmem>>, vector<64x64xf32>
    %c0_32 = arith.constant 0 : index
    %c352 = arith.constant 352 : index
    %141 = vector.load %arg9[%c0_32, %c352] : memref<1x640xf32, #tpu.memory_space<vmem>>, vector<1x64xf32>
    %cst_33 = arith.constant dense<0.000000e+00> : vector<2x64xf32>
    %142 = tpu.matmul %127, %140, %cst_33 {dimension_numbers = #tpu.dot_dimension_numbers<[1], [0], [0], [1], [0, 0, 1, 1], [], []>} : vector<2x64xf32>, vector<64x64xf32>, vector<2x64xf32> -> vector<2x64xf32>
    %143 = vector.broadcast %141 : vector<1x64xf32> to vector<2x64xf32>
    %144 = arith.addf %142, %143 : vector<2x64xf32>
    %cst_34 = arith.constant 0.000000e+00 : f32
    %145 = vector.broadcast %cst_34 : f32 to vector<2x64xf32>
    %146 = arith.maximumf %144, %145 : vector<2x64xf32>
    %c0_35 = arith.constant 0 : index
    %c288 = arith.constant 288 : index
    %147 = vector.load %arg7[%c0_35, %c288] : memref<64x400xf32, #tpu.memory_space<vmem>>, vector<64x32xf32>
    %c0_36 = arith.constant 0 : index
    %c416 = arith.constant 416 : index
    %148 = vector.load %arg9[%c0_36, %c416] : memref<1x640xf32, #tpu.memory_space<vmem>>, vector<1x32xf32>
    %cst_37 = arith.constant dense<0.000000e+00> : vector<2x32xf32>
    %149 = tpu.matmul %146, %147, %cst_37 {dimension_numbers = #tpu.dot_dimension_numbers<[1], [0], [0], [1], [0, 0, 1, 1], [], []>} : vector<2x64xf32>, vector<64x32xf32>, vector<2x32xf32> -> vector<2x32xf32>
    %150 = vector.broadcast %148 : vector<1x32xf32> to vector<2x32xf32>
    %151 = arith.addf %149, %150 : vector<2x32xf32>
    %152 = tpu.concatenate %139, %151 in 0 : vector<2x32xf32>, vector<2x32xf32> -> vector<4x32xf32>
    %c0_38 = arith.constant 0 : index
    %c128 = arith.constant 128 : index
    %153 = vector.load %arg8[%c0_38, %c128] : memref<32x176xf32, #tpu.memory_space<vmem>>, vector<32x32xf32>
    %c0_39 = arith.constant 0 : index
    %c592 = arith.constant 592 : index
    %154 = vector.load %arg9[%c0_39, %c592] : memref<1x640xf32, #tpu.memory_space<vmem>>, vector<1x32xf32>
    %cst_40 = arith.constant dense<0.000000e+00> : vector<4x32xf32>
    %155 = tpu.matmul %152, %153, %cst_40 {dimension_numbers = #tpu.dot_dimension_numbers<[1], [0], [0], [1], [0, 0, 1, 1], [], []>} : vector<4x32xf32>, vector<32x32xf32>, vector<4x32xf32> -> vector<4x32xf32>
    %156 = vector.broadcast %154 : vector<1x32xf32> to vector<4x32xf32>
    %157 = arith.addf %155, %156 : vector<4x32xf32>
    %cst_41 = arith.constant 0.000000e+00 : f32
    %158 = vector.broadcast %cst_41 : f32 to vector<4x32xf32>
    %159 = arith.maximumf %157, %158 : vector<4x32xf32>
    %c0_42 = arith.constant 0 : index
    %c160 = arith.constant 160 : index
    %160 = vector.load %arg8[%c0_42, %c160] : memref<32x176xf32, #tpu.memory_space<vmem>>, vector<32x16xf32>
    %c0_43 = arith.constant 0 : index
    %c624 = arith.constant 624 : index
    %161 = vector.load %arg9[%c0_43, %c624] : memref<1x640xf32, #tpu.memory_space<vmem>>, vector<1x16xf32>
    %cst_44 = arith.constant dense<0.000000e+00> : vector<4x16xf32>
    %162 = tpu.matmul %159, %160, %cst_44 {dimension_numbers = #tpu.dot_dimension_numbers<[1], [0], [0], [1], [0, 0, 1, 1], [], []>} : vector<4x32xf32>, vector<32x16xf32>, vector<4x16xf32> -> vector<4x16xf32>
    %163 = vector.broadcast %161 : vector<1x16xf32> to vector<4x16xf32>
    %164 = arith.addf %162, %163 : vector<4x16xf32>
    %c0_45 = arith.constant 0 : index
    %c0_46 = arith.constant 0 : index
    %165 = vector.load %arg8[%c0_45, %c0_46] : memref<32x176xf32, #tpu.memory_space<vmem>>, vector<32x64xf32>
    %c0_47 = arith.constant 0 : index
    %c96 = arith.constant 96 : index
    %166 = vector.load %arg9[%c0_47, %c96] : memref<1x640xf32, #tpu.memory_space<vmem>>, vector<1x64xf32>
    %cst_48 = arith.constant dense<0.000000e+00> : vector<2x64xf32>
    %167 = tpu.matmul %139, %165, %cst_48 {dimension_numbers = #tpu.dot_dimension_numbers<[1], [0], [0], [1], [0, 0, 1, 1], [], []>} : vector<2x32xf32>, vector<32x64xf32>, vector<2x64xf32> -> vector<2x64xf32>
    %168 = vector.broadcast %166 : vector<1x64xf32> to vector<2x64xf32>
    %169 = arith.addf %167, %168 : vector<2x64xf32>
    %cst_49 = arith.constant 0.000000e+00 : f32
    %170 = vector.broadcast %cst_49 : f32 to vector<2x64xf32>
    %171 = arith.maximumf %169, %170 : vector<2x64xf32>
    %172 = math.absf %169 : vector<2x64xf32>
    %cst_50 = arith.constant 0.000000e+00 : f32
    %173 = vector.broadcast %cst_50 : f32 to vector<2x64xf32>
    %174 = arith.subf %173, %172 : vector<2x64xf32>
    %175 = math.exp %174 : vector<2x64xf32>
    %cst_51 = arith.constant 1.000000e+00 : f32
    %176 = vector.broadcast %cst_51 : f32 to vector<2x64xf32>
    %177 = arith.addf %176, %175 : vector<2x64xf32>
    %178 = math.log %177 : vector<2x64xf32>
    %179 = arith.addf %171, %178 : vector<2x64xf32>
    %c0_52 = arith.constant 0 : index
    %c32 = arith.constant 32 : index
    %180 = vector.load %arg7[%c0_52, %c32] : memref<64x400xf32, #tpu.memory_space<vmem>>, vector<64x192xf32>
    %c0_53 = arith.constant 0 : index
    %c160_54 = arith.constant 160 : index
    %181 = vector.load %arg9[%c0_53, %c160_54] : memref<1x640xf32, #tpu.memory_space<vmem>>, vector<1x192xf32>
    %cst_55 = arith.constant dense<0.000000e+00> : vector<2x192xf32>
    %182 = tpu.matmul %179, %180, %cst_55 {dimension_numbers = #tpu.dot_dimension_numbers<[1], [0], [0], [1], [0, 0, 1, 1], [], []>} : vector<2x64xf32>, vector<64x192xf32>, vector<2x192xf32> -> vector<2x192xf32>
    %183 = vector.broadcast %181 : vector<1x192xf32> to vector<2x192xf32>
    %184 = arith.addf %182, %183 : vector<2x192xf32>
    %c0_56 = arith.constant 0 : index
    %c64_57 = arith.constant 64 : index
    %185 = vector.load %arg8[%c0_56, %c64_57] : memref<32x176xf32, #tpu.memory_space<vmem>>, vector<32x64xf32>
    %c0_58 = arith.constant 0 : index
    %c448 = arith.constant 448 : index
    %186 = vector.load %arg9[%c0_58, %c448] : memref<1x640xf32, #tpu.memory_space<vmem>>, vector<1x64xf32>
    %cst_59 = arith.constant dense<0.000000e+00> : vector<2x64xf32>
    %187 = tpu.matmul %151, %185, %cst_59 {dimension_numbers = #tpu.dot_dimension_numbers<[1], [0], [0], [1], [0, 0, 1, 1], [], []>} : vector<2x32xf32>, vector<32x64xf32>, vector<2x64xf32> -> vector<2x64xf32>
    %188 = vector.broadcast %186 : vector<1x64xf32> to vector<2x64xf32>
    %189 = arith.addf %187, %188 : vector<2x64xf32>
    %cst_60 = arith.constant 0.000000e+00 : f32
    %190 = vector.broadcast %cst_60 : f32 to vector<2x64xf32>
    %191 = arith.maximumf %189, %190 : vector<2x64xf32>
    %192 = math.absf %189 : vector<2x64xf32>
    %cst_61 = arith.constant 0.000000e+00 : f32
    %193 = vector.broadcast %cst_61 : f32 to vector<2x64xf32>
    %194 = arith.subf %193, %192 : vector<2x64xf32>
    %195 = math.exp %194 : vector<2x64xf32>
    %cst_62 = arith.constant 1.000000e+00 : f32
    %196 = vector.broadcast %cst_62 : f32 to vector<2x64xf32>
    %197 = arith.addf %196, %195 : vector<2x64xf32>
    %198 = math.log %197 : vector<2x64xf32>
    %199 = arith.addf %191, %198 : vector<2x64xf32>
    %c0_63 = arith.constant 0 : index
    %c320 = arith.constant 320 : index
    %200 = vector.load %arg7[%c0_63, %c320] : memref<64x400xf32, #tpu.memory_space<vmem>>, vector<64x80xf32>
    %c0_64 = arith.constant 0 : index
    %c512 = arith.constant 512 : index
    %201 = vector.load %arg9[%c0_64, %c512] : memref<1x640xf32, #tpu.memory_space<vmem>>, vector<1x80xf32>
    %cst_65 = arith.constant dense<0.000000e+00> : vector<2x80xf32>
    %202 = tpu.matmul %199, %200, %cst_65 {dimension_numbers = #tpu.dot_dimension_numbers<[1], [0], [0], [1], [0, 0, 1, 1], [], []>} : vector<2x64xf32>, vector<64x80xf32>, vector<2x80xf32> -> vector<2x80xf32>
    %203 = vector.broadcast %201 : vector<1x80xf32> to vector<2x80xf32>
    %204 = arith.addf %202, %203 : vector<2x80xf32>
    %205 = vector.extract_strided_slice %164 {offsets = [0, 0], sizes = [2, 16], strides = [1, 1]} : vector<4x16xf32> to vector<2x16xf32>
    %206 = vector.extract_strided_slice %164 {offsets = [2, 0], sizes = [2, 16], strides = [1, 1]} : vector<4x16xf32> to vector<2x16xf32>
    %cst_66 = arith.constant 0.000000e+00 : f32
    %207 = vector.broadcast %cst_66 : f32 to vector<2x80xf32>
    %208 = tpu.concatenate %184, %204, %205, %206, %207 in 1 : vector<2x192xf32>, vector<2x80xf32>, vector<2x16xf32>, vector<2x16xf32>, vector<2x80xf32> -> vector<2x384xf32>
    %c0_67 = arith.constant 0 : index
    %c0_68 = arith.constant 0 : index
    %209 = vector.load %arg10[%c0_67, %c0_68] : memref<2x384xf32, #tpu.memory_space<vmem>>, vector<2x384xf32>
    tpu.vector_store %arg10[%c0_67, %c0_68], %208 {strides = array<i32>} : memref<2x384xf32, #tpu.memory_space<vmem>>, vector<2x384xf32>,
    return
  }
}

</mosaic_0001>

<bundles_post_ra>
// kernel: tpu_custom_call.1
= control target key start
LH: loop header
LB: loop body
LE: loop exit
PB: predicated region body
PF: predicated region fallthrough
CT: control target
= control target key end

     0   :  { %15 = vsyncpa [#allocation3], 0  ;;  %s3210_s0 = inlined_call_operand.vmem [shape: s32[2,16], index: 0, kind: input, shape index: {}]   ;;  %s3211_s1 = inlined_call_operand.vmem [shape: s32[2,8], index: 1, kind: input, shape index: {}]   ;;  %s3212_s2 = inlined_call_operand.vmem [shape: f32[16,12], index: 2, kind: input, shape index: {}]   ;;  %s3213_s3 = inlined_call_operand.vmem [shape: f32[10,64], index: 3, kind: input, shape index: {}]   ;;  %s3214_s4 = inlined_call_operand.vmem [shape: f32[8,48], index: 4, kind: input, shape index: {}]   ;;  %s3215_s5 = inlined_call_operand.vmem [shape: f32[8,1], index: 5, kind: input, shape index: {}]   ;;  %s3216_s6 = inlined_call_operand.vmem [shape: f32[128,64], index: 6, kind: input, shape index: {}]   ;;  %s3217_s7 = inlined_call_operand.hbm [shape: f32[64,400], index: 7, kind: input, shape index: {}]   ;;  %s3218_s8 = inlined_call_operand.vmem [shape: f32[32,176], index: 8, kind: input, shape index: {}]   ;;  %s3219_s9 = inlined_call_operand.vmem [shape: f32[1,640], index: 9, kind: input, shape index: {}]   ;;  %s3220_s10 = inlined_call_operand.hbm [shape: f32[2,384], index: 10, kind: output, shape index: {}]  }
   0x1   :  { %16 = vsyncpa [#allocation4], 0  ;;  %s2574_s13 = smov [#allocation2]   ;;  %s2526_s17 = scalar_lea.hbm %s3217_s7, 4096 }
   0x2   :  { %s36_s14 = sshll.u32 %s2574_s13, 4  ;;  %p2527_p0 = scmp.ne.s32.totalorder %s3217_s7, %s2526_s17  ;;  %s37_s14 = int_to_ptr.vmem [resolvable:$true] %s36_s14 }
   0x3   :  { %p2530_p1 = scmp.lt.u32.totalorder %s2526_s17, %s3217_s7 }
   0x5   :  { %p2532_p2 = pnand %p2530_p1, %p2527_p0 }
   0x7   :  { %2535 = shalt.err (!%p2532_p2)
}
   0x8   :  { %s2536_s22 = scalar_lea.vmem %s37_s14, 4096  ;;  %p2541_p4 = scmp.lt.s32.totalorder %s37_s14, %s37_s14 }
   0x9   :  { %p2537_p3 = scmp.ne.s32.totalorder %s37_s14, %s2536_s22  ;;  %p2542_p5 = scmp.lt.s32.totalorder %s2536_s22, %s2536_s22 }
   0xb   :  { %p2543_p6 = por %p2542_p5, %p2541_p4 }
   0xd   :  { %p2544_p7 = pnand %p2543_p6, %p2537_p3 }
   0xf   :  { %2547 = shalt.err (!%p2544_p7)
}
  0x10   :  { %s2575_s23 = smov 512   ;;  %s2576_s24 = smov 32  }
  0x11   :  { %42 = dma.hbm_to_vmem [thread:$0]  %s3217_s7, 4096, %s37_s14, [#allocation3], %s2575_s23, %s2575_s23, %s2576_s24  }
  0x12   :  { %2570 = dma.done.wait [#allocation3], 4096  }
  0x13   :  { %2571 = vsyncadd [#allocation3], 4294963200  ;;  %v51_v0 = vlaneseq  ;;  %v50_v5 = vld [vmem:[%s3210_s0] sm:$0x3]  ;;  %vm87_vm0 = vcmask 97280   ;;  %v2577_v9 = vmov 0.0  }
  0x14   :  { %v85_v6 = vld [vmem:[%s3212_s2] sm:$0xff]  ;;  %s2578_s0 = smov 16   ;;  %vm82_vm5 = vcmask 130048   ;;  %vm94_vm6 = vcmask 1043456   ;;  %vm2579_vm7 = vmmov 1   ;;  %v86_v21 = vld [vmem:[%s3212_s2 + $0x8] sm:$0xff] }
  0x15   :  { %v2671_v1 = vshrl.u32 %v51_v0, 7  ;;  %1925 = vmatprep.mubr.msk.f32.mxu1 %vm87_vm0, %v85_v6  ;;  %vm2106_vm8 = vmpackc.low %vm94_vm6, %vm2579_vm7  ;;  %s2580_s12 = smov 1   ;;  %s2581_s13 = smov 113   ;;  %vm181_vm9 = vcmask 7168   ;;  %vm184_vm10 = vcmask 138240   ;;  %v2582_v35 = vmov 0.0|0.0  }
  0x16   :  { %2120 = vmatprep.subr.bf16.mxu0 %v2582_v35  ;;  %s2583_s2 = smov 126   ;;  %s2584_s14 = smov 127   ;;  %vm2585_vm11 = vmmov 0   ;;  %v246_v45 = vld [vmem:[%s3215_s5] sm:$0xff]  ;;  %v2586_v48 = vmov 0   ;;  %vm252_vm12 = vcmask 392192  }
  0x17   :  { %v2674_v2 = vsub.s32 0, %v2671_v1  ;;  %v2677_v3 = vsub.s32 1, %v2671_v1  ;;  %v53_v4 = vadd.s32 8, %v2671_v1  ;;  %1947 = vmatprep.mubr.msk.f32.mxu0 %vm2585_vm11, %v2577_v9  ;;  %2314 = vset.pattern.permute.xlu0 %v2586_v48  ;;  %s2587_s18 = smov 111   ;;  %vm331_vm13 = vcmask 121856   ;;  %s2596_s23 = smov 64  }
  0x18   :  { %2320 = vset.pattern.permute.xlu1 %v2586_v48  ;;  %vm505_vm14 = vcmask 1041408   ;;  %s2597_s25 = smov 48   ;;  %s2598_s26 = smov 96  }
  0x19   :  { %v67_v7 = vrot.slane %v50_v5, %v2677_v3  ;;  %v57_v8 = vrot.slane %v50_v5, %v2674_v2  ;;  %vm2122_vm15 = vmpackc.low %vm505_vm14, %vm2579_vm7  ;;  %s2599_s27 = smov 80  }
  0x1b   :  { %vm68_vm1 = vcmp.eq.s32.totalorder %v2671_v1, %v67_v7  ;;  %vm69_vm2 = vcmp.eq.s32.totalorder %v53_v4, %v67_v7  ;;  %vm59_vm3 = vcmp.eq.s32.totalorder %v53_v4, %v57_v8  ;;  %vm58_vm4 = vcmp.eq.s32.totalorder %v2671_v1, %v57_v8 }
  0x1c   :  { %v1806_v10 = vsel %vm68_vm1, 1.0, %v2577_v9  ;;  %v1807_v11 = vsel %vm69_vm2, 1.0, %v2577_v9  ;;  %v1804_v14 = vsel %vm58_vm4, 1.0, %v2577_v9  ;;  %v1805_v15 = vsel %vm59_vm3, 1.0, %v2577_v9 }
  0x1d   :  { %v2264_v12 = vpack.i.bf16 %v1807_v11, %v1806_v10  ;;  %v245_v11 = vld [vmem:[%s3214_s4] sm:$0xff] }
  0x1f   :  { %2265 = vrot.lane.b32.xlu0 %v2264_v12, %s2578_s0 }
  0x91   :  { %v2266_v13 = vpop.permute.xlu0 %2265 }
  0x92   :  { %v2268_v16 = vunpack.i.h.bf16 %v2266_v13  ;;  %v2267_v17 = vunpack.i.l.bf16 %v2266_v13 }
  0x94   :  { %v83_v18 = vsel %vm82_vm5, %v1804_v14, %v2267_v17  ;;  %v84_v19 = vsel %vm82_vm5, %v1805_v15, %v2268_v16  ;;  %v2588_v17 = vmov 1  }
  0x95   :  { %v2105_v20 = vpack.c.bf16 %v84_v19, %v83_v18  ;;  %v440_v18 = vld [vmem:[%s3211_s1] sm:$0x3]  ;;  %v2589_v19 = vmov 4  }
  0x97   :  { %2107 = vmatprep.subr.msk.bf16.mxu1 %vm2106_vm8, %v2105_v20 }
  0x98   :  { %2110 = vmatpush3.bf16.msk.msra.mxu1 %vm2106_vm8, %v2105_v20  ;;  %v2590_v20 = vmov 7  }
  0x99   :  { %2111 = vmatprep.subr.bf16.mxu1 %v2582_v35 }
  0x9b   :  { %1926 = vmatmul.mubr.msk.f32.vlgmr.msra.gmra.mrb[0].mxu1 %vm87_vm0, %v86_v21 }
  0x9c   :  { %1940 = vmatprep.mubr.msk.f32.mxu1 %vm2585_vm11, %v2577_v9 }
 0x16e   :  { %v1927_v22 = vpop.f32.mrb[0].mxu1 }
 0x16f   :  { %v164_v23 = vpop.f32.mrb[1].mxu1 }
 0x170   :  { %v2269_v24 = vpack.i.bf16 %v1927_v22, %v164_v23 }
 0x172   :  { %2275 = vrot.lane.b32.xlu1 %v2269_v24, %s2580_s12  ;;  %2270 = vrot.lane.b32.xlu0 %v2269_v24, %s2581_s13 }
 0x1e4   :  { %v2276_v25 = vpop.permute.xlu1 %2275  ;;  %v2271_v26 = vpop.permute.xlu0 %2270 }
 0x1e5   :  { %v2278_v27 = vunpack.i.h.bf16 %v2276_v25  ;;  %v2277_v28 = vunpack.i.l.bf16 %v2276_v25  ;;  %v2273_v29 = vunpack.i.h.bf16 %v2271_v26  ;;  %v2272_v30 = vunpack.i.l.bf16 %v2271_v26 }
 0x1e6   :  { %v2591_v26 = vmov 2  }
 0x1e7   :  { %v183_v31 = vsel %vm181_vm9, 0.0, %v2278_v27  ;;  %v182_v32 = vsel %vm181_vm9, 0.0, %v2277_v28  ;;  %v208_v33 = vsel %vm181_vm9, 0.0, %v2273_v29  ;;  %v207_v34 = vsel %vm181_vm9, 0.0, %v2272_v30  ;;  %v499_v30 = vld [vmem:[%s3213_s3] sm:$0xff] }
 0x1e8   :  { %v210_v36 = vsel %vm184_vm10, %v208_v33, 0.0  ;;  %v209_v37 = vsel %vm184_vm10, %v207_v34, 0.0  ;;  %v186_v39 = vsel %vm184_vm10, %v183_v31, 0.0  ;;  %v185_v40 = vsel %vm184_vm10, %v182_v32, 0.0  ;;  %v500_v31 = vld [vmem:[%s3213_s3 + $0x8] sm:$0x3] }
 0x1e9   :  { %v2284_v38 = vpack.i.bf16 %v210_v36, %v209_v37  ;;  %v2294_v41 = vpack.i.bf16 %v186_v39, %v185_v40  ;;  %v2592_v27 = vmov 3   ;;  %v2593_v28 = vmov 5   ;;  %s2595_s3 = smov 112  }
 0x1ea   :  { %v2594_v29 = vmov 6   ;;  %v2121_v32 = vpack.c.bf16 %v500_v31, %v499_v30  ;;  %v2830_v30 = vld [vmem:[#allocation2 + $0xa8] sm:$0xff]  ;;  %v2833_v31 = vld [vmem:[#allocation2 + $0xb0] sm:$0xff]  ;;  %vm369_vm10 = vcmask 261120  }
 0x1eb   :  { %2285 = vrot.lane.b32.xlu0 %v2284_v38, %s2583_s2  ;;  %2280 = vrot.lane.b32.xlu1 %v2284_v38, %s2584_s14 }
 0x1ec   :  { %2123 = vmatpush3.bf16.msk.msra.mxu0 %vm2122_vm15, %v2121_v32  ;;  %v2835_v32 = vld [vmem:[#allocation2 + $0xc8] sm:$0xff]  ;;  %vm374_vm15 = vcmask 654336  }
 0x1ed   :  { %2124 = vmatprep.subr.bf16.mxu0 %v2582_v35 }
 0x1ef   :  { %2295 = vrot.lane.b32.xlu0 %v2294_v41, %s2584_s14  ;;  %2290 = vrot.lane.b32.xlu1 %v2284_v38, %s2578_s0 }
 0x1f3   :  { %2300 = vrot.lane.b32.xlu0 %v2294_v41, %s2583_s2 }
 0x1f7   :  { %249 = vperm.xlu0 %2314, %v246_v45  }
 0x1fb   :  { %2321 = vset.pattern.permute.xlu0 %v2588_v17 }
 0x25d   :  { %v2286_v42 = vpop.permute.xlu0 %2285  ;;  %v2281_v43 = vpop.permute.xlu1 %2280 }
 0x25e   :  { %2305 = vrot.lane.b32.xlu1 %v2281_v43, %s2578_s0 }
 0x261   :  { %v2291_v44 = vpop.permute.xlu1 %2290  ;;  %v2296_v52 = vpop.permute.xlu0 %2295 }
 0x262   :  { %v2293_v46 = vunpack.i.h.bf16 %v2291_v44  ;;  %v2292_v47 = vunpack.i.l.bf16 %v2291_v44  ;;  %2310 = vrot.lane.b32.xlu1 %v2286_v42, %s2578_s0  ;;  %v2298_v54 = vunpack.i.h.bf16 %v2296_v52  ;;  %v2297_v55 = vunpack.i.l.bf16 %v2296_v52 }
 0x264   :  { %v240_v49 = vsel %vm82_vm5, %v186_v39, %v2293_v46  ;;  %v239_v50 = vsel %vm82_vm5, %v185_v40, %v2292_v47 }
 0x265   :  { %v2112_v51 = vpack.c.bf16 %v240_v49, %v239_v50  ;;  %v2301_v58 = vpop.permute.xlu0 %2300 }
 0x266   :  { %v2303_v63 = vunpack.i.h.bf16 %v2301_v58  ;;  %v2302_v4 = vunpack.i.l.bf16 %v2301_v58 }
 0x267   :  { %2113 = vmatpush3.bf16.msra.mxu1 %v2112_v51 }
 0x268   :  { %2114 = vmatprep.subr.bf16.mxu1 %v2582_v35 }
 0x276   :  { %v250_v12 = vpop.permute.xlu0 %249 }
 0x2d0   :  { %v2306_v53 = vpop.permute.xlu1 %2305 }
 0x2d1   :  { %v2308_v56 = vunpack.i.h.bf16 %v2306_v53  ;;  %v2307_v57 = vunpack.i.l.bf16 %v2306_v53 }
 0x2d3   :  { %v242_v59 = vsel %vm82_vm5, %v2298_v54, %v2308_v56  ;;  %v241_v60 = vsel %vm82_vm5, %v2297_v55, %v2307_v57  ;;  %v2779_v55 = vand.u32 127, %v51_v0  ;;  %v2788_v0 = vld [vmem:[#allocation2 + $0x8] sm:$0xff] }
 0x2d4   :  { %v2115_v61 = vpack.c.bf16 %v242_v59, %v241_v60  ;;  %v2311_v62 = vpop.permute.xlu1 %2310 }
 0x2d5   :  { %v2313_v5 = vunpack.i.h.bf16 %v2311_v62  ;;  %v2312_v6 = vunpack.i.l.bf16 %v2311_v62 }
 0x2d6   :  { %2116 = vmatpush3.bf16.msra.mxu1 %v2115_v61 }
 0x2d7   :  { %v244_v7 = vsel %vm82_vm5, %v2303_v63, %v2313_v5  ;;  %v243_v8 = vsel %vm82_vm5, %v2302_v4, %v2312_v6  ;;  %2117 = vmatprep.subr.bf16.mxu1 %v2582_v35  ;;  %v2790_v63 = vld [vmem:[#allocation2 + $0x10] sm:$0xff] }
 0x2d8   :  { %v2118_v10 = vpack.c.bf16 %v244_v7, %v243_v8 }
 0x2da   :  { %2119 = vmatpush3.bf16.msra.mxu1 %v2118_v10  ;;  %v2358_v10 = vpack.i.bf16 %v2790_v63, %v2788_v0 }
 0x2db   :  { %2148 = vmatprep.subr.bf16.mxu1 %v2582_v35 }
 0x2dd   :  { %1941 = vmatmul.mubr.msk.f32.vlgmr.msra.gmra.mrb[2].mxu1 %vm252_vm12, %v245_v11  ;;  %v2798_v11 = vld [vmem:[#allocation2 + $0x28] sm:$0xff] }
 0x2de   :  { %2001 = vmatprep.mubr.msk.f32.mxu1 %vm2585_vm11, %v2577_v9 }
 0x3b0   :  { %v322_v13 = vpop.f32.mrb[2].mxu1 }
 0x3b1   :  { %v323_v14 = vadd.f32 %v322_v13, %v250_v12  ;;  %v1942_v15 = vpop.f32.mrb[3].mxu1  ;;  %v2800_v12 = vld [vmem:[#allocation2 + $0x30] sm:$0xff]  ;;  %v2802_v13 = vld [vmem:[#allocation2 + $0x48] sm:$0xff] }
 0x3b3   :  { %v326_v16 = vmax.f32 %v323_v14, 0.0  ;;  %v2804_v14 = vld [vmem:[#allocation2 + $0x50] sm:$0xff] }
 0x3b5   :  { %328 = vrot.lane.b32.xlu0 %v326_v16, %s2584_s14  ;;  %380 = vrot.lane.b32.xlu1 %v326_v16, %s2587_s18 }
 0x3b9   :  { %334 = vrot.lane.b32.xlu0 %v326_v16, %s2580_s12  ;;  %389 = vrot.lane.b32.xlu1 %v326_v16, %s2581_s13 }
 0x3bd   :  { %451 = vperm.xlu0 %2321, %v440_v18  }
 0x3c1   :  { %2324 = vset.pattern.permute.xlu0 %v2589_v19  ;;  %v2363_v19 = vpack.i.bf16 %v2800_v12, %v2798_v11 }
 0x3c2   :  { %472 = vperm.xlu0 %2324, %v440_v18  }
 0x3c6   :  { %2327 = vset.pattern.permute.xlu0 %v2590_v20  ;;  %v2368_v20 = vpack.i.bf16 %v2804_v14, %v2802_v13 }
 0x3c7   :  { %493 = vperm.xlu0 %2327, %v440_v18  }
 0x427   :  { %v381_v21 = vpop.permute.xlu1 %380  ;;  %v329_v33 = vpop.permute.xlu0 %328 }
 0x428   :  { %v383_v23 = vsel %vm331_vm13, %v381_v21, 0.0  ;;  %v332_v36 = vsel %vm331_vm13, %v329_v33, 0.0  ;;  %v2814_v21 = vld [vmem:[#allocation2 + $0x68] sm:$0xff]  ;;  %v2837_v33 = vld [vmem:[#allocation2 + $0xd0] sm:$0xff]  ;;  %vm372_vm13 = vcmask 523264  }
 0x429   :  { %v333_v39 = vmax.f32 %v326_v16, %v332_v36 }
 0x42b   :  { %v390_v22 = vpop.permute.xlu1 %389  ;;  %v335_v34 = vpop.permute.xlu0 %334 }
 0x42c   :  { %v392_v24 = vsel %vm181_vm9, 0.0, %v390_v22  ;;  %v337_v37 = vsel %vm181_vm9, 0.0, %v335_v34  ;;  %vm501_vm9 = vcmask 80896  }
 0x42d   :  { %v2315_v25 = vpack.i.bf16 %v392_v24, %v383_v23  ;;  %v2762_v41 = vmax.f32 %v333_v39, %v337_v37  ;;  %v2817_v23 = vld [vmem:[#allocation2 + $0x70] sm:$0xff]  ;;  %v2819_v24 = vld [vmem:[#allocation2 + $0x88] sm:$0xff]  ;;  %v2388_v39 = vpack.i.bf16 %v2837_v33, %v2835_v32 }
 0x42f   :  { %2316 = vrot.lane.b32.xlu1 %v2315_v25, %s2578_s0  ;;  %v344_v45 = vrot.slane %v2762_v41, 2  ;;  %v340_v47 = vrot.slane %v2762_v41, 1  ;;  %v352_v53 = vrot.slane %v2762_v41, 4  ;;  %v348_v54 = vrot.slane %v2762_v41, 3  ;;  %v2821_v25 = vld [vmem:[#allocation2 + $0x90] sm:$0xff] }
 0x430   :  { %v360_v61 = vrot.slane %v2762_v41, 6  ;;  %v356_v62 = vrot.slane %v2762_v41, 5  ;;  %v364_v15 = vrot.slane %v2762_v41, 7 }
 0x433   :  { %444 = vperm.xlu1 %2320, %v440_v18  }
 0x437   :  { %2322 = vset.pattern.permute.xlu1 %v2591_v26 }
 0x438   :  { %458 = vperm.xlu1 %2322, %v440_v18  }
 0x43c   :  { %2323 = vset.pattern.permute.xlu1 %v2592_v27  ;;  %v452_v60 = vpop.permute.xlu0 %451 }
 0x43d   :  { %465 = vperm.xlu1 %2323, %v440_v18   ;;  %vm453_vm0 = vcmp.eq.s32.totalorder %v2779_v55, %v452_v60 }
 0x43e   :  { %v1813_v8 = vsel %vm453_vm0, 1.0, %v2577_v9  ;;  %vm376_vm0 = vcmask 785408  }
 0x441   :  { %2325 = vset.pattern.permute.xlu1 %v2593_v28  ;;  %v2373_v28 = vpack.i.bf16 %v2817_v23, %v2814_v21 }
 0x442   :  { %479 = vperm.xlu1 %2325, %v440_v18  }
 0x446   :  { %2326 = vset.pattern.permute.xlu1 %v2594_v29  ;;  %v2378_v29 = vpack.i.bf16 %v2821_v25, %v2819_v24 }
 0x447   :  { %486 = vperm.xlu1 %2326, %v440_v18   ;;  %v473_v18 = vpop.permute.xlu0 %472 }
 0x448   :  { %vm474_vm3 = vcmp.eq.s32.totalorder %v2779_v55, %v473_v18 }
 0x449   :  { %v1816_v36 = vsel %vm474_vm3, 1.0, %v2577_v9 }
 0x4a1   :  { %v2317_v38 = vpop.permute.xlu1 %2316 }
 0x4a2   :  { %v2318_v40 = vunpack.i.l.bf16 %v2317_v38  ;;  %v2319_v42 = vunpack.i.h.bf16 %v2317_v38  ;;  %v2383_v38 = vpack.i.bf16 %v2833_v31, %v2830_v30 }
 0x4a4   :  { %v388_v43 = vmax.f32 %v326_v16, %v2318_v40 }
 0x4a6   :  { %v2764_v44 = vmax.f32 %v388_v43, %v2319_v42  ;;  %v2847_v43 = vld [vmem:[#allocation2 + $0xe8] sm:$0xff] }
 0x4a8   :  { %399 = vrot.lane.b32.xlu1 %v2764_v44, %s2595_s3  ;;  %v408_v46 = vrot.slane %v2764_v44, 3  ;;  %v404_v48 = vrot.slane %v2764_v44, 2  ;;  %v416_v51 = vrot.slane %v2764_v44, 5  ;;  %v412_v52 = vrot.slane %v2764_v44, 4 }
 0x4a9   :  { %v424_v58 = vrot.slane %v2764_v44, 7  ;;  %v420_v59 = vrot.slane %v2764_v44, 6 }
 0x4aa   :  { %v2333_v49 = vpack.i.bf16 %v344_v45, %v408_v46  ;;  %v2328_v50 = vpack.i.bf16 %v340_v47, %v404_v48  ;;  %v2343_v56 = vpack.i.bf16 %v352_v53, %v416_v51  ;;  %v2338_v57 = vpack.i.bf16 %v348_v54, %v412_v52  ;;  %v2849_v45 = vld [vmem:[#allocation2 + $0xf0] sm:$0xff]  ;;  %v494_v46 = vpop.permute.xlu0 %493  ;;  %v580_v52 = vld [vmem:[%s3216_s6] sm:$0xff]  ;;  %v581_v53 = vld [vmem:[%s3216_s6 + $0x8] sm:$0xff] }
 0x4ab   :  { %v2353_v4 = vpack.i.bf16 %v360_v61, %v424_v58  ;;  %v2348_v5 = vpack.i.bf16 %v356_v62, %v420_v59  ;;  %v2398_v48 = vpack.i.bf16 %v2800_v12, %v2790_v63  ;;  %vm495_vm7 = vcmp.eq.s32.totalorder %v2779_v55, %v494_v46  ;;  %v582_v61 = vld [vmem:[%s3216_s6 + $0x10] sm:$0xff]  ;;  %v583_v62 = vld [vmem:[%s3216_s6 + $0x18] sm:$0xff] }
 0x4ac   :  { %2334 = vrot.lane.b32.xlu0 %v2333_v49, %s2576_s24  ;;  %2329 = vrot.lane.b32.xlu1 %v2328_v50, %s2578_s0  ;;  %v2393_v49 = vpack.i.bf16 %v2849_v45, %v2847_v43  ;;  %v2408_v58 = vpack.i.bf16 %v2833_v31, %v2821_v25  ;;  %v2125_v59 = vpack.c.bf16 %v581_v53, %v580_v52  ;;  %v2934_v52 = vld [vmem:[#allocation2] sm:$0xff] }
 0x4ad   :  { %v2936_v53 = vld [vmem:[#allocation2 + $0x20] sm:$0xff] }
 0x4b0   :  { %2344 = vrot.lane.b32.xlu0 %v2343_v56, %s2596_s23  ;;  %2339 = vrot.lane.b32.xlu1 %v2338_v57, %s2597_s25  ;;  %v1819_v56 = vsel %vm495_vm7, 1.0, %v2577_v9  ;;  %v2403_v57 = vpack.i.bf16 %v2817_v23, %v2804_v14 }
 0x4b2   :  { %v445_v6 = vpop.permute.xlu1 %444 }
 0x4b3   :  { %vm446_vm1 = vcmp.eq.s32.totalorder %v2779_v55, %v445_v6  ;;  %v585_v6 = vld [vmem:[%s3216_s6 + $0x28] sm:$0xff] }
 0x4b4   :  { %2354 = vrot.lane.b32.xlu0 %v2353_v4, %s2598_s26  ;;  %2349 = vrot.lane.b32.xlu1 %v2348_v5, %s2599_s27  ;;  %v1812_v7 = vsel %vm446_vm1, 1.0, %v2577_v9  ;;  %v2128_v4 = vpack.c.bf16 %v583_v62, %v582_v61  ;;  %v584_v5 = vld [vmem:[%s3216_s6 + $0x20] sm:$0xff]  ;;  %vm378_vm1 = vcmask 916480  }
 0x4b5   :  { %v456_v17 = vadd.f32 %v1813_v8, %v1812_v7  ;;  %v2131_v7 = vpack.c.bf16 %v585_v6, %v584_v5  ;;  %v586_v8 = vld [vmem:[%s3216_s6 + $0x30] sm:$0xff] }
 0x4b7   :  { %v459_v16 = vpop.permute.xlu1 %458 }
 0x4b8   :  { %365 = vrot.lane.b32.xlu1 %v364_v15, %s2595_s3  ;;  %vm460_vm2 = vcmp.eq.s32.totalorder %v2779_v55, %v459_v16  ;;  %2359 = vrot.lane.b32.xlu0 %v2358_v10, %s2576_s24  ;;  %v587_v10 = vld [vmem:[%s3216_s6 + $0x38] sm:$0xff]  ;;  %v588_v16 = vld [vmem:[%s3216_s6 + $0x40] sm:$0xff] }
 0x4b9   :  { %v1814_v22 = vsel %vm460_vm2, 1.0, %v2577_v9  ;;  %v2134_v15 = vpack.c.bf16 %v587_v10, %v586_v8  ;;  %v2953_v8 = vld [vmem:[#allocation2 + $0xa0] sm:$0xff]  ;;  %vm438_vm2 = vcmask 1040384  }
 0x4ba   :  { %v463_v26 = vadd.f32 %v1814_v22, %v456_v17  ;;  %v589_v17 = vld [vmem:[%s3216_s6 + $0x48] sm:$0xff] }
 0x4bb   :  { %v2137_v18 = vpack.c.bf16 %v589_v17, %v588_v16 }
 0x4bc   :  { %v466_v27 = vpop.permute.xlu1 %465  ;;  %2364 = vrot.lane.b32.xlu1 %v2363_v19, %s2576_s24  ;;  %2369 = vrot.lane.b32.xlu0 %v2368_v20, %s2576_s24  ;;  %v590_v19 = vld [vmem:[%s3216_s6 + $0x50] sm:$0xff]  ;;  %v591_v20 = vld [vmem:[%s3216_s6 + $0x58] sm:$0xff] }
 0x4bd   :  { %vm467_vm4 = vcmp.eq.s32.totalorder %v2779_v55, %v466_v27  ;;  %v2140_v22 = vpack.c.bf16 %v591_v20, %v590_v19  ;;  %v593_v27 = vld [vmem:[%s3216_s6 + $0x68] sm:$0xff] }
 0x4be   :  { %v1815_v34 = vsel %vm467_vm4, 1.0, %v2577_v9 }
 0x4bf   :  { %v470_v37 = vadd.f32 %v1815_v34, %v463_v26  ;;  %v592_v26 = vld [vmem:[%s3216_s6 + $0x60] sm:$0xff]  ;;  %v595_v34 = vld [vmem:[%s3216_s6 + $0x78] sm:$0xff] }
 0x4c0   :  { %2374 = vrot.lane.b32.xlu1 %v2373_v28, %s2576_s24  ;;  %2379 = vrot.lane.b32.xlu0 %v2378_v29, %s2576_s24  ;;  %v2143_v28 = vpack.c.bf16 %v593_v27, %v592_v26  ;;  %v594_v29 = vld [vmem:[%s3216_s6 + $0x70] sm:$0xff] }
 0x4c1   :  { %v477_v40 = vadd.f32 %v1816_v36, %v470_v37  ;;  %v480_v42 = vpop.permute.xlu1 %479  ;;  %v2146_v36 = vpack.c.bf16 %v595_v34, %v594_v29 }
 0x4c2   :  { %vm481_vm6 = vcmp.eq.s32.totalorder %v2779_v55, %v480_v42 }
 0x4c3   :  { %v1817_v47 = vsel %vm481_vm6, 1.0, %v2577_v9 }
 0x4c4   :  { %2384 = vrot.lane.b32.xlu1 %v2383_v38, %s2576_s24  ;;  %2389 = vrot.lane.b32.xlu0 %v2388_v39, %s2576_s24  ;;  %v484_v50 = vadd.f32 %v1817_v47, %v477_v40  ;;  %v402_v38 = vrot.slane %v2764_v44, 1 }
 0x4c6   :  { %v487_v51 = vpop.permute.xlu1 %486 }
 0x4c7   :  { %vm488_vm8 = vcmp.eq.s32.totalorder %v2779_v55, %v487_v51 }
 0x4c8   :  { %v1818_v54 = vsel %vm488_vm8, 1.0, %v2577_v9  ;;  %2394 = vrot.lane.b32.xlu1 %v2393_v49, %s2576_s24  ;;  %2399 = vrot.lane.b32.xlu0 %v2398_v48, %s2598_s26 }
 0x4c9   :  { %v491_v55 = vadd.f32 %v1818_v54, %v484_v50  ;;  %v2938_v54 = vld [vmem:[#allocation2 + $0x40] sm:$0xff] }
 0x4cb   :  { %v498_v60 = vadd.f32 %v1819_v56, %v491_v55 }
 0x4cc   :  { %2409 = vrot.lane.b32.xlu0 %v2408_v58, %s2598_s26  ;;  %2404 = vrot.lane.b32.xlu1 %v2403_v57, %s2598_s26  ;;  %v2149_v57 = vpack.c.bf16 %v2936_v53, %v2934_v52  ;;  %v2942_v58 = vld [vmem:[#allocation2 + $0x60] sm:$0xff] }
 0x4cd   :  { %1948 = vmatmul.mubr.msk.f32.vlgmr.msra.gmra.mrb[0].mxu0 %vm501_vm9, %v498_v60 }
 0x4ce   :  { %2126 = vmatpush3.bf16.msra.mxu0 %v2125_v59  ;;  %1982 = vmatprep.mubr.msk.f32.mxu0 %vm2585_vm11, %v2577_v9 }
 0x4cf   :  { %2127 = vmatprep.subr.bf16.mxu0 %v2582_v35  ;;  %2150 = vmatpush3.bf16.msra.mxu1 %v2149_v57 }
 0x4d0   :  { %2151 = vmatprep.subr.bf16.mxu1 %v2582_v35 }
 0x4d2   :  { %2129 = vmatpush3.bf16.msra.mxu0 %v2128_v4  ;;  %v2152_v4 = vpack.c.bf16 %v2942_v58, %v2938_v54 }
 0x4d3   :  { %2130 = vmatprep.subr.bf16.mxu0 %v2582_v35 }
 0x4d4   :  { %2153 = vmatpush3.bf16.msra.mxu1 %v2152_v4 }
 0x4d5   :  { %2154 = vmatprep.subr.bf16.mxu1 %v2582_v35 }
 0x4d6   :  { %2132 = vmatpush3.bf16.msra.mxu0 %v2131_v7  ;;  %v2951_v7 = vld [vmem:[#allocation2 + $0x80] sm:$0xff] }
 0x4d7   :  { %2133 = vmatprep.subr.bf16.mxu0 %v2582_v35  ;;  %v2155_v26 = vpack.c.bf16 %v2953_v8, %v2951_v7 }
 0x4d9   :  { %2156 = vmatpush3.bf16.msra.mxu1 %v2155_v26 }
 0x4da   :  { %2135 = vmatpush3.bf16.msra.mxu0 %v2134_v15  ;;  %2157 = vmatprep.subr.bf16.mxu1 %v2582_v35 }
 0x4db   :  { %2136 = vmatprep.subr.bf16.mxu0 %v2582_v35 }
 0x4de   :  { %2138 = vmatpush3.bf16.msra.mxu0 %v2137_v18 }
 0x4df   :  { %2139 = vmatprep.subr.bf16.mxu0 %v2582_v35 }
 0x4e2   :  { %2141 = vmatpush3.bf16.msra.mxu0 %v2140_v22 }
 0x4e3   :  { %2142 = vmatprep.subr.bf16.mxu0 %v2582_v35 }
 0x4e6   :  { %2144 = vmatpush3.bf16.msra.mxu0 %v2143_v28 }
 0x4e7   :  { %2145 = vmatprep.subr.bf16.mxu0 %v2582_v35 }
 0x4ea   :  { %2147 = vmatpush3.bf16.msra.mxu0 %v2146_v36 }
 0x4eb   :  { %2172 = vmatprep.subr.bf16.mxu0 %v2582_v35 }
 0x51a   :  { %v400_v37 = vpop.permute.xlu1 %399 }
 0x51b   :  { %v428_v48 = vsel %vm82_vm5, %v400_v37, %v402_v38 }
 0x51e   :  { %v2335_v39 = vpop.permute.xlu0 %2334  ;;  %v2330_v40 = vpop.permute.xlu1 %2329 }
 0x51f   :  { %v2337_v42 = vunpack.i.h.bf16 %v2335_v39  ;;  %v2332_v46 = vunpack.i.h.bf16 %v2330_v40  ;;  %v2331_v47 = vunpack.i.l.bf16 %v2330_v40  ;;  %v2336_v49 = vunpack.i.l.bf16 %v2335_v39 }
 0x521   :  { %v368_v50 = vsel %vm82_vm5, %v2762_v41, %v2332_v46  ;;  %v429_v51 = vsel %vm369_vm10, %v428_v48, %v2331_v47  ;;  %v2970_v46 = vld [vmem:[#allocation2 + $0xe0] sm:$0xff] }
 0x522   :  { %v2345_v44 = vpop.permute.xlu0 %2344  ;;  %v2340_v56 = vpop.permute.xlu1 %2339  ;;  %v370_v41 = vsel %vm369_vm10, %v368_v50, %v2337_v42  ;;  %v430_v62 = vsel %vm252_vm12, %v429_v51, %v2336_v49  ;;  %v2968_v42 = vld [vmem:[#allocation2 + $0xc0] sm:$0xff] }
 0x523   :  { %v2342_v55 = vunpack.i.h.bf16 %v2340_v56  ;;  %v2341_v59 = vunpack.i.l.bf16 %v2340_v56  ;;  %v2347_v60 = vunpack.i.h.bf16 %v2345_v44  ;;  %v2346_v61 = vunpack.i.l.bf16 %v2345_v44  ;;  %v774_v51 = vld [vmem:[%s3219_s9 + $0x2] sm:$0x3] }
 0x524   :  { %v2158_v47 = vpack.c.bf16 %v2970_v46, %v2968_v42  ;;  %v783_v56 = vrot.slane %v774_v51, %v2677_v3  ;;  %v779_v57 = vrot.slane %v774_v51, %v2674_v2 }
 0x525   :  { %v371_v5 = vsel %vm252_vm12, %v370_v41, %v2342_v55  ;;  %v431_v6 = vsel %vm372_vm13, %v430_v62, %v2341_v59  ;;  %v2413_v41 = vpack.i.bf16 %v2849_v45, %v2837_v33 }
 0x526   :  { %v2355_v10 = vpop.permute.xlu0 %2354  ;;  %v2350_v15 = vpop.permute.xlu1 %2349  ;;  %v432_v20 = vsel %vm374_vm15, %v431_v6, %v2346_v61  ;;  %v373_v22 = vsel %vm372_vm13, %v371_v5, %v2347_v60  ;;  %2159 = vmatpush3.bf16.msra.mxu1 %v2158_v47  ;;  %850 = vrot.lane.b32.xlu0 %v783_v56, %s2576_s24  ;;  %v1822_v61 = vld [vmem:[%s3219_s9] ss:$0 sm:$0xff] }
 0x527   :  { %v2357_v16 = vunpack.i.h.bf16 %v2355_v10  ;;  %v2356_v17 = vunpack.i.l.bf16 %v2355_v10  ;;  %v2352_v18 = vunpack.i.h.bf16 %v2350_v15  ;;  %v2351_v19 = vunpack.i.l.bf16 %v2350_v15  ;;  %2160 = vmatprep.subr.bf16.mxu1 %v2582_v35  ;;  %848 = vrot.lane.b32.xlu1 %v779_v57, %s2576_s24 }
 0x529   :  { %v433_v27 = vsel %vm376_vm0, %v432_v20, %v2351_v19  ;;  %v375_v28 = vsel %vm374_vm15, %v373_v22, %v2352_v18 }
 0x52a   :  { %v366_v29 = vpop.permute.xlu1 %365  ;;  %v377_v34 = vsel %vm376_vm0, %v375_v28, %v2357_v16  ;;  %v434_v36 = vsel %vm378_vm1, %v433_v27, %v2356_v17  ;;  %v2360_v40 = vpop.permute.xlu0 %2359  ;;  %682 = vrot.lane.b32.xlu0 %v1822_v61, %s2596_s23 }
 0x52b   :  { %v379_v37 = vsel %vm378_vm1, %v377_v34, %v366_v29  ;;  %v436_v38 = vrot.slane %v434_v36, 7  ;;  %2414 = vrot.lane.b32.xlu1 %v2413_v41, %s2598_s26  ;;  %v2362_v10 = vunpack.i.h.bf16 %v2360_v40  ;;  %v2361_v15 = vunpack.i.l.bf16 %v2360_v40 }
 0x52d   :  { %v439_v39 = vsel %vm438_vm2, %v379_v37, %v436_v38  ;;  %v832_v18 = vsel %vm369_vm10, %v2361_v15, %v2362_v10 }
 0x52e   :  { %1983 = vmatmul.mubr.f32.vlgmr.msra.gmra.mrb[2].mxu0 %v439_v39  ;;  %v2370_v48 = vpop.permute.xlu0 %2369  ;;  %v2365_v5 = vpop.permute.xlu1 %2364 }
 0x52f   :  { %2039 = vmatprep.mubr.msk.f32.mxu0 %vm2585_vm11, %v2577_v9  ;;  %v2367_v16 = vunpack.i.h.bf16 %v2365_v5  ;;  %v2366_v17 = vunpack.i.l.bf16 %v2365_v5  ;;  %v2372_v22 = vunpack.i.h.bf16 %v2370_v48  ;;  %v2371_v26 = vunpack.i.l.bf16 %v2370_v48 }
 0x531   :  { %v833_v19 = vsel %vm369_vm10, %v2366_v17, %v2367_v16 }
 0x532   :  { %v2380_v49 = vpop.permute.xlu0 %2379  ;;  %v2375_v6 = vpop.permute.xlu1 %2374  ;;  %v2161_v34 = vpack.c.bf16 %v833_v19, %v832_v18 }
 0x533   :  { %v2377_v27 = vunpack.i.h.bf16 %v2375_v6  ;;  %v2376_v28 = vunpack.i.l.bf16 %v2375_v6  ;;  %v2382_v38 = vunpack.i.h.bf16 %v2380_v49  ;;  %v2381_v39 = vunpack.i.l.bf16 %v2380_v49 }
 0x535   :  { %v835_v56 = vsel %vm369_vm10, %v2376_v28, %v2377_v27  ;;  %v836_v48 = vsel %vm369_vm10, %v2381_v39, %v2382_v38  ;;  %v3028_v39 = vld [vmem:[%s3218_s8 + $0x20] sm:$0xff] }
 0x536   :  { %v2390_v50 = vpop.permute.xlu0 %2389  ;;  %v2385_v20 = vpop.permute.xlu1 %2384 }
 0x537   :  { %v2387_v47 = vunpack.i.h.bf16 %v2385_v20  ;;  %v2386_v51 = vunpack.i.l.bf16 %v2385_v20  ;;  %v2392_v49 = vunpack.i.h.bf16 %v2390_v50  ;;  %v2391_v41 = vunpack.i.l.bf16 %v2390_v50 }
 0x539   :  { %v838_v5 = vsel %vm369_vm10, %v2391_v41, %v2392_v49  ;;  %v1040_v41 = vld [vmem:[%s3218_s8 + $0x28] sm:$0xff] }
 0x53a   :  { %v2400_v44 = vpop.permute.xlu0 %2399  ;;  %v2395_v57 = vpop.permute.xlu1 %2394 }
 0x53b   :  { %v2402_v55 = vunpack.i.h.bf16 %v2400_v44  ;;  %v2401_v59 = vunpack.i.l.bf16 %v2400_v44  ;;  %v834_v44 = vsel %vm369_vm10, %v2371_v26, %v2372_v22 }
 0x53d   :  { %v2173_v60 = vpack.c.bf16 %v2402_v55, %v2401_v59  ;;  %v2164_v55 = vpack.c.bf16 %v835_v56, %v834_v44  ;;  %v837_v59 = vsel %vm369_vm10, %v2386_v51, %v2387_v47  ;;  %v3033_v47 = vld [vmem:[%s3218_s8 + $0x30] sm:$0xff]  ;;  %v1038_v56 = vld [vmem:[%s3218_s8 + $0x8] sm:$0xff] }
 0x53e   :  { %v2410_v50 = vpop.permute.xlu0 %2409  ;;  %v2405_v16 = vpop.permute.xlu1 %2404  ;;  %v2200_v51 = vpack.c.bf16 %v3033_v47, %v3028_v39  ;;  %v2423_v44 = vpack.i.bf16 %v3033_v47, %v3028_v39  ;;  %v2488_v39 = vpack.i.bf16 %v2802_v13, %v2938_v54  ;;  %v2493_v47 = vpack.i.bf16 %v2814_v21, %v2942_v58 }
 0x53f   :  { %2174 = vmatpush3.bf16.msra.mxu0 %v2173_v60  ;;  %v2397_v60 = vunpack.i.h.bf16 %v2395_v57  ;;  %v2412_v17 = vunpack.i.h.bf16 %v2410_v50  ;;  %v2411_v18 = vunpack.i.l.bf16 %v2410_v50  ;;  %v2407_v19 = vunpack.i.h.bf16 %v2405_v16 }
 0x540   :  { %2175 = vmatprep.subr.bf16.mxu0 %v2582_v35  ;;  %v2406_v20 = vunpack.i.l.bf16 %v2405_v16  ;;  %2424 = vrot.lane.b32.xlu0 %v2423_v44, %s2596_s23  ;;  %v1607_v16 = vld [vmem:[#allocation2 + $0x98] sm:$0xff]  ;;  %v2508_v13 = vpack.i.bf16 %v2835_v32, %v2968_v42  ;;  %v2513_v21 = vpack.i.bf16 %v2847_v43, %v2970_v46 }
 0x541   :  { %v2179_v27 = vpack.c.bf16 %v2412_v17, %v2411_v18  ;;  %v1609_v17 = vld [vmem:[#allocation2 + $0xb8] sm:$0xff] }
 0x542   :  { %v2176_v22 = vpack.c.bf16 %v2407_v19, %v2406_v20  ;;  %v2458_v18 = vpack.i.bf16 %v1609_v17, %v2833_v31  ;;  %v1611_v19 = vld [vmem:[#allocation2 + $0xd8] sm:$0xff] }
 0x543   :  { %v2468_v20 = vpack.i.bf16 %v1611_v19, %v2837_v33 }
 0x544   :  { %2177 = vmatpush3.bf16.msra.mxu0 %v2176_v22 }
 0x545   :  { %2178 = vmatprep.subr.bf16.mxu0 %v2582_v35 }
 0x548   :  { %2180 = vmatpush3.bf16.msra.mxu0 %v2179_v27  ;;  %v3087_v27 = vld [vmem:[%s3219_s9 + $0x4] ss:$0 sm:$0xff] }
 0x549   :  { %2181 = vmatprep.subr.bf16.mxu0 %v2582_v35 }
 0x599   :  { %v3008_v26 = vpop.permute.xlu1 %848 }
 0x5a0   :  { %v575_v62 = vpop.f32.mrb[0].mxu0 }
 0x5a1   :  { %v1949_v4 = vpop.f32.mrb[1].mxu0  ;;  %v579_v15 = vmul.f32 0.125, %v575_v62  ;;  %v2415_v62 = vpop.permute.xlu1 %2414 }
 0x5a2   :  { %v2167_v4 = vpack.c.bf16 %v837_v59, %v836_v48  ;;  %v2417_v28 = vunpack.i.h.bf16 %v2415_v62  ;;  %v1599_v48 = vld [vmem:[#allocation2 + $0x18] sm:$0xff] }
 0x5a3   :  { %v1601_v59 = vld [vmem:[#allocation2 + $0x38] sm:$0xff] }
 0x601   :  { %v669_v29 = vpop.f32.mrb[2].mxu0 }
 0x602   :  { %v670_v36 = vadd.f32 %v1822_v61, %v669_v29  ;;  %v1984_v37 = vpop.f32.mrb[3].mxu0  ;;  %v2396_v61 = vunpack.i.l.bf16 %v2395_v57  ;;  %v2416_v29 = vunpack.i.l.bf16 %v2415_v62  ;;  %v1039_v57 = vld [vmem:[%s3218_s8 + $0x18] sm:$0xff] }
 0x603   :  { %v3021_v37 = vld [vmem:[%s3218_s8 + $0x10] sm:$0xff]  ;;  %v2185_v49 = vpack.c.bf16 %v1039_v57, %v1038_v56 }
 0x604   :  { %v673_v40 = vmax.f32 %v670_v36, 0.0  ;;  %v839_v6 = vsel %vm369_vm10, %v2396_v61, %v2397_v60  ;;  %v3016_v36 = vld [vmem:[%s3218_s8] sm:$0xff]  ;;  %v1041_v60 = vld [vmem:[%s3218_s8 + $0x38] sm:$0xff] }
 0x605   :  { %v2170_v10 = vpack.c.bf16 %v839_v6, %v838_v5  ;;  %v2197_v38 = vpack.c.bf16 %v3021_v37, %v3016_v36  ;;  %v2188_v61 = vpack.c.bf16 %v1041_v60, %v1040_v41  ;;  %v2433_v5 = vpack.i.bf16 %v1601_v59, %v2800_v12  ;;  %v1603_v6 = vld [vmem:[#allocation2 + $0x58] sm:$0xff] }
 0x606   :  { %2002 = vmatmul.mubr.msk.f32.vlgmr.msra.gmra.mrb[4].mxu1 %vm372_vm13, %v673_v40  ;;  %v2418_v40 = vpack.i.bf16 %v3021_v37, %v3016_v36  ;;  %v2453_v12 = vpack.i.bf16 %v1607_v16, %v2821_v25  ;;  %v1221_v25 = vld [vmem:[%s3219_s9] sm:$0x3]  ;;  %v2478_v37 = vpack.i.bf16 %v2788_v0, %v2934_v52  ;;  %v2498_v0 = vpack.i.bf16 %v2819_v24, %v2951_v7 }
 0x607   :  { %2162 = vmatpush3.bf16.msra.mxu1 %v2161_v34  ;;  %2020 = vmatprep.mubr.msk.f32.mxu1 %vm2585_vm11, %v2577_v9  ;;  %v2182_v34 = vpack.c.bf16 %v2417_v28, %v2416_v29  ;;  %v1226_v31 = vrot.slane %v1221_v25, %v2674_v2  ;;  %v1230_v33 = vrot.slane %v1221_v25, %v2677_v3  ;;  %v851_v28 = vpop.permute.xlu0 %850 }
 0x608   :  { %2163 = vmatprep.subr.bf16.mxu1 %v2582_v35  ;;  %2419 = vrot.lane.b32.xlu1 %v2418_v40, %s2596_s23  ;;  %v852_v29 = vsel %vm369_vm10, %v3008_v26, %v851_v28 }
 0x609   :  { %2183 = vmatpush3.bf16.msra.mxu0 %v2182_v34 }
 0x60a   :  { %2196 = vmatprep.subr.bf16.mxu0 %v2582_v35 }
 0x60b   :  { %2165 = vmatpush3.bf16.msra.mxu1 %v2164_v55  ;;  %v1825_v55 = vld [vmem:[%s3219_s9 + $0x3] ss:$0 sm:$0xff] }
 0x60c   :  { %2166 = vmatprep.subr.bf16.mxu1 %v2582_v35  ;;  %958 = vrot.lane.b32.xlu1 %v1825_v55, %s2598_s26 }
 0x60d   :  { %1514 = vrot.lane.b32.xlu0 %v1825_v55, %s2596_s23 }
 0x60f   :  { %2168 = vmatpush3.bf16.msra.mxu1 %v2167_v4  ;;  %v2428_v4 = vpack.i.bf16 %v1599_v48, %v2790_v63  ;;  %v2448_v63 = vpack.i.bf16 %v1039_v57, %v1038_v56  ;;  %v683_v57 = vpop.permute.xlu0 %682 }
 0x610   :  { %2169 = vmatprep.subr.bf16.mxu1 %v2582_v35 }
 0x611   :  { %2429 = vrot.lane.b32.xlu1 %v2428_v4, %s2596_s23  ;;  %2434 = vrot.lane.b32.xlu0 %v2433_v5, %s2596_s23 }
 0x613   :  { %2171 = vmatpush3.bf16.msra.mxu1 %v2170_v10  ;;  %v1605_v10 = vld [vmem:[#allocation2 + $0x78] sm:$0xff]  ;;  %v2425_v26 = vpop.permute.xlu0 %2424 }
 0x614   :  { %2184 = vmatprep.subr.bf16.mxu1 %v2582_v35  ;;  %v2443_v50 = vpack.i.bf16 %v1605_v10, %v2817_v23  ;;  %v1613_v23 = vld [vmem:[#allocation2 + $0xf8] sm:$0xff] }
 0x615   :  { %v2473_v22 = vpack.i.bf16 %v1613_v23, %v2849_v45 }
 0x616   :  { %2021 = vmatmul.mubr.msk.f32.vlgmr.msra.gmra.mrb[6].mxu1 %vm372_vm13, %v579_v15  ;;  %v2438_v15 = vpack.i.bf16 %v1603_v6, %v2804_v14  ;;  %2444 = vrot.lane.b32.xlu0 %v2443_v50, %s2596_s23  ;;  %v2463_v14 = vpack.i.bf16 %v1041_v60, %v1040_v41  ;;  %v2427_v41 = vunpack.i.h.bf16 %v2425_v26  ;;  %v2426_v60 = vunpack.i.l.bf16 %v2425_v26 }
 0x617   :  { %2050 = vmatprep.mubr.msk.f32.mxu1 %vm2585_vm11, %v2577_v9  ;;  %2186 = vmatpush3.bf16.msra.mxu1 %v2185_v49 }
 0x618   :  { %2187 = vmatprep.subr.bf16.mxu1 %v2582_v35  ;;  %2439 = vrot.lane.b32.xlu1 %v2438_v15, %s2596_s23  ;;  %v2222_v36 = vpack.c.bf16 %v2427_v41, %v2426_v60 }
 0x61a   :  { %2454 = vrot.lane.b32.xlu0 %v2453_v12, %s2596_s23 }
 0x61b   :  { %2189 = vmatpush3.bf16.msra.mxu1 %v2188_v61 }
 0x61c   :  { %2190 = vmatprep.subr.bf16.mxu1 %v2582_v35  ;;  %2449 = vrot.lane.b32.xlu1 %v2448_v63, %s2598_s26 }
 0x61e   :  { %2464 = vrot.lane.b32.xlu0 %v2463_v14, %s2598_s26 }
 0x620   :  { %2459 = vrot.lane.b32.xlu1 %v2458_v18, %s2596_s23 }
 0x622   :  { %2474 = vrot.lane.b32.xlu0 %v2473_v22, %s2596_s23 }
 0x624   :  { %2469 = vrot.lane.b32.xlu1 %v2468_v20, %s2596_s23 }
 0x626   :  { %1231 = vrot.lane.b32.xlu0 %v1226_v31, %s2576_s24 }
 0x628   :  { %1048 = vrot.lane.b32.xlu1 %v3087_v27, %s2597_s25 }
 0x62a   :  { %2479 = vrot.lane.b32.xlu0 %v2478_v37, %s2598_s26 }
 0x62c   :  { %1233 = vrot.lane.b32.xlu1 %v1230_v33, %s2576_s24 }
 0x62e   :  { %2489 = vrot.lane.b32.xlu0 %v2488_v39, %s2598_s26 }
 0x632   :  { %2499 = vrot.lane.b32.xlu0 %v2498_v0, %s2598_s26 }
 0x636   :  { %2509 = vrot.lane.b32.xlu0 %v2508_v13, %s2598_s26 }
 0x63a   :  { %1141 = vrot.lane.b32.xlu0 %v3087_v27, %s2578_s0 }
 0x67a   :  { %v2420_v55 = vpop.permute.xlu1 %2419 }
 0x67b   :  { %v2422_v48 = vunpack.i.h.bf16 %v2420_v55  ;;  %v2421_v59 = vunpack.i.l.bf16 %v2420_v55 }
 0x67d   :  { %v2219_v49 = vpack.c.bf16 %v2422_v48, %v2421_v59 }
 0x67e   :  { %v959_v24 = vpop.permute.xlu1 %958 }
 0x67f   :  { %v3141_v52 = vpop.permute.xlu0 %1514 }
 0x6d9   :  { %v754_v45 = vpop.f32.mrb[4].mxu1 }
 0x6da   :  { %v2003_v62 = vpop.f32.mrb[5].mxu1  ;;  %v3106_v61 = vadd.f32 %v754_v45, %v683_v57 }
 0x6e9   :  { %v923_v34 = vpop.f32.mrb[6].mxu1 }
 0x6ea   :  { %v924_v40 = vadd.f32 %v923_v34, %v852_v29  ;;  %v2022_v44 = vpop.f32.mrb[7].mxu1 }
 0x6ec   :  { %v927_v56 = vmax.f32 %v924_v40, 0.0 }
 0x6ee   :  { %2040 = vmatmul.mubr.msk.f32.vlgmr.msra.gmra.mrb[4].mxu0 %vm372_vm13, %v927_v56 }
 0x6ef   :  { %2198 = vmatpush3.bf16.msra.mxu0 %v2197_v38  ;;  %2072 = vmatprep.mubr.msk.f32.mxu0 %vm2585_vm11, %v2577_v9  ;;  %v2483_v38 = vpack.i.bf16 %v2798_v11, %v2936_v53  ;;  %v2503_v11 = vpack.i.bf16 %v2830_v30, %v2953_v8  ;;  %v2430_v30 = vpop.permute.xlu1 %2429  ;;  %v2435_v53 = vpop.permute.xlu0 %2434 }
 0x6f0   :  { %2199 = vmatprep.subr.bf16.mxu0 %v2582_v35  ;;  %v2432_v8 = vunpack.i.h.bf16 %v2430_v30  ;;  %v2431_v32 = vunpack.i.l.bf16 %v2430_v30  ;;  %v2437_v42 = vunpack.i.h.bf16 %v2435_v53 }
 0x6f1   :  { %2484 = vrot.lane.b32.xlu1 %v2483_v38, %s2598_s26 }
 0x6f2   :  { %v1663_v46 = vsel %vm372_vm13, %v2431_v32, %v2432_v8 }
 0x6f3   :  { %2201 = vmatpush3.bf16.msra.mxu0 %v2200_v51  ;;  %v2440_v54 = vpop.permute.xlu1 %2439  ;;  %v2445_v58 = vpop.permute.xlu0 %2444  ;;  %v2436_v51 = vunpack.i.l.bf16 %v2435_v53 }
 0x6f4   :  { %2218 = vmatprep.subr.bf16.mxu0 %v2582_v35  ;;  %v2442_v5 = vunpack.i.h.bf16 %v2440_v54  ;;  %v2441_v6 = vunpack.i.l.bf16 %v2440_v54  ;;  %v2447_v10 = vunpack.i.h.bf16 %v2445_v58  ;;  %v2446_v15 = vunpack.i.l.bf16 %v2445_v58 }
 0x6f5   :  { %2494 = vrot.lane.b32.xlu1 %v2493_v47, %s2598_s26  ;;  %v1664_v4 = vsel %vm372_vm13, %v2436_v51, %v2437_v42 }
 0x6f6   :  { %2073 = vmatmul.mubr.msk.f32.vlgmr.msra.gmra.mrb[6].mxu0 %vm369_vm10, %v3106_v61  ;;  %v2225_v63 = vpack.c.bf16 %v1664_v4, %v1663_v46  ;;  %v1665_v22 = vsel %vm372_vm13, %v2441_v6, %v2442_v5  ;;  %v1666_v25 = vsel %vm372_vm13, %v2446_v15, %v2447_v10 }
 0x6f7   :  { %2220 = vmatpush3.bf16.msra.mxu0 %v2219_v49  ;;  %2083 = vmatprep.mubr.msk.f32.mxu0 %vm2585_vm11, %v2577_v9  ;;  %v2450_v7 = vpop.permute.xlu1 %2449  ;;  %v2455_v43 = vpop.permute.xlu0 %2454  ;;  %v2228_v40 = vpack.c.bf16 %v1666_v25, %v1665_v22 }
 0x6f8   :  { %2221 = vmatprep.subr.bf16.mxu0 %v2582_v35  ;;  %v2452_v12 = vunpack.i.h.bf16 %v2450_v7  ;;  %v2451_v17 = vunpack.i.l.bf16 %v2450_v7  ;;  %v2457_v18 = vunpack.i.h.bf16 %v2455_v43  ;;  %v2456_v14 = vunpack.i.l.bf16 %v2455_v43 }
 0x6f9   :  { %2504 = vrot.lane.b32.xlu1 %v2503_v11, %s2598_s26 }
 0x6fa   :  { %v2191_v45 = vpack.c.bf16 %v2452_v12, %v2451_v17  ;;  %v1667_v44 = vsel %vm372_vm13, %v2456_v14, %v2457_v18 }
 0x6fb   :  { %2223 = vmatpush3.bf16.msra.mxu0 %v2222_v36  ;;  %v2460_v50 = vpop.permute.xlu1 %2459  ;;  %v2465_v16 = vpop.permute.xlu0 %2464 }
 0x6fc   :  { %2224 = vmatprep.subr.bf16.mxu0 %v2582_v35  ;;  %v2462_v19 = vunpack.i.h.bf16 %v2460_v50  ;;  %v2461_v23 = vunpack.i.l.bf16 %v2460_v50  ;;  %v2467_v62 = vunpack.i.h.bf16 %v2465_v16  ;;  %v2466_v28 = vunpack.i.l.bf16 %v2465_v16 }
 0x6fd   :  { %2514 = vrot.lane.b32.xlu1 %v2513_v21, %s2598_s26 }
 0x6fe   :  { %v1668_v56 = vsel %vm372_vm13, %v2461_v23, %v2462_v19  ;;  %v2194_v41 = vpack.c.bf16 %v2467_v62, %v2466_v28 }
 0x6ff   :  { %v2470_v29 = vpop.permute.xlu1 %2469  ;;  %v2475_v55 = vpop.permute.xlu0 %2474  ;;  %v2231_v60 = vpack.c.bf16 %v1668_v56, %v1667_v44 }
 0x700   :  { %v2472_v57 = vunpack.i.h.bf16 %v2470_v29  ;;  %v2471_v48 = vunpack.i.l.bf16 %v2470_v29  ;;  %v2477_v59 = vunpack.i.h.bf16 %v2475_v55  ;;  %v2476_v26 = vunpack.i.l.bf16 %v2475_v55 }
 0x702   :  { %v1669_v37 = vsel %vm372_vm13, %v2471_v48, %v2472_v57  ;;  %v1670_v38 = vsel %vm372_vm13, %v2476_v26, %v2477_v59 }
 0x703   :  { %v1049_v47 = vpop.permute.xlu1 %1048  ;;  %v1232_v0 = vpop.permute.xlu0 %1231 }
 0x707   :  { %v1234_v11 = vpop.permute.xlu1 %1233  ;;  %v2480_v13 = vpop.permute.xlu0 %2479 }
 0x708   :  { %v2481_v30 = vunpack.i.l.bf16 %v2480_v13  ;;  %v1235_v43 = vsel %vm369_vm10, %v1232_v0, %v1234_v11 }
 0x70b   :  { %v2490_v10 = vpop.permute.xlu0 %2489 }
 0x70f   :  { %v2500_v18 = vpop.permute.xlu0 %2499 }
 0x710   :  { %v2502_v62 = vunpack.i.h.bf16 %v2500_v18  ;;  %v2501_v29 = vunpack.i.l.bf16 %v2500_v18 }
 0x712   :  { %v1397_v59 = vsel %vm376_vm0, %v2501_v29, %v2502_v62 }
 0x763   :  { %v2485_v21 = vpop.permute.xlu1 %2484 }
 0x764   :  { %v2487_v53 = vunpack.i.h.bf16 %v2485_v21  ;;  %v2486_v54 = vunpack.i.l.bf16 %v2485_v21 }
 0x766   :  { %v1394_v8 = vsel %vm376_vm0, %v2486_v54, %v2487_v53 }
 0x767   :  { %v2495_v15 = vpop.permute.xlu1 %2494 }
 0x768   :  { %v2497_v12 = vunpack.i.h.bf16 %v2495_v15  ;;  %v2496_v17 = vunpack.i.l.bf16 %v2495_v15 }
 0x76b   :  { %v2505_v23 = vpop.permute.xlu1 %2504 }
 0x76f   :  { %v2515_v55 = vpop.permute.xlu1 %2514 }
 0x7c1   :  { %v1030_v20 = vpop.f32.mrb[4].mxu0 }
 0x7c2   :  { %v1031_v31 = vadd.f32 %v1030_v20, %v959_v24  ;;  %v2041_v33 = vpop.f32.mrb[5].mxu0  ;;  %v2482_v24 = vunpack.i.h.bf16 %v2480_v13 }
 0x7c4   :  { %v1035_v34 = vrot.slane %v1031_v31, 6  ;;  %2084 = vmatmul.mubr.msk.f32.vlgmr.msra.gmra.mrb[8].mxu0 %vm369_vm10, %v1031_v31  ;;  %v1393_v58 = vsel %vm376_vm0, %v2481_v30, %v2482_v24  ;;  %v2202_v7 = vpack.c.bf16 %v2487_v53, %v2482_v24 }
 0x7c5   :  { %2226 = vmatpush3.bf16.msra.mxu0 %v2225_v63  ;;  %2102 = vmatprep.mubr.msk.f32.mxu0 %vm2585_vm11, %v2577_v9  ;;  %v2204_v32 = vpack.c.bf16 %v1394_v8, %v1393_v58  ;;  %v2492_v63 = vunpack.i.h.bf16 %v2490_v10 }
 0x7c6   :  { %v1037_v49 = vsel %vm505_vm14, %v3106_v61, %v1035_v34  ;;  %2227 = vmatprep.subr.bf16.mxu0 %v2582_v35  ;;  %v2234_v61 = vpack.c.bf16 %v1670_v38, %v1669_v37  ;;  %v2507_v34 = vunpack.i.h.bf16 %v2505_v23  ;;  %v2516_v37 = vunpack.i.l.bf16 %v2515_v55 }
 0x7c7   :  { %2051 = vmatmul.mubr.msk.f32.vlgmr.msra.gmra.mrb[8].mxu1 %vm369_vm10, %v1037_v49  ;;  %v2206_v56 = vpack.c.bf16 %v2497_v12, %v2492_v63 }
 0x7c8   :  { %2192 = vmatpush3.bf16.msra.mxu1 %v2191_v45  ;;  %2061 = vmatprep.mubr.msk.f32.mxu1 %vm2585_vm11, %v2577_v9  ;;  %v1396_v45 = vsel %vm376_vm0, %v2496_v17, %v2497_v12  ;;  %v2210_v26 = vpack.c.bf16 %v2507_v34, %v2502_v62 }
 0x7c9   :  { %v1306_v36 = vpop.f32.mrb[6].mxu0  ;;  %2193 = vmatprep.subr.bf16.mxu1 %v2582_v35  ;;  %2229 = vmatpush3.bf16.msra.mxu0 %v2228_v40  ;;  %v2506_v40 = vunpack.i.l.bf16 %v2505_v23 }
 0x7ca   :  { %v2074_v39 = vpop.f32.mrb[7].mxu0  ;;  %2230 = vmatprep.subr.bf16.mxu0 %v2582_v35  ;;  %v3173_v46 = vadd.f32 %v1306_v36, %v1235_v43  ;;  %v2517_v36 = vunpack.i.h.bf16 %v2515_v55 }
 0x7cb   :  { %v1398_v49 = vsel %vm376_vm0, %v2506_v40, %v2507_v34 }
 0x7cc   :  { %2195 = vmatpush3.bf16.msra.mxu1 %v2194_v41  ;;  %v1311_v4 = vand.u32 2147483647, %v3173_v46  ;;  %v2212_v39 = vpack.c.bf16 %v1398_v49, %v1397_v59  ;;  %v1400_v0 = vsel %vm376_vm0, %v2516_v37, %v2517_v36 }
 0x7cd   :  { %2232 = vmatpush3.bf16.msra.mxu0 %v2231_v60  ;;  %2203 = vmatprep.subr.bf16.mxu1 %v2202_v7 }
 0x7ce   :  { %2233 = vmatprep.subr.bf16.mxu0 %v2582_v35  ;;  %v1335_v35 = vld [vmem:[%s3219_s9 + $0x1] sm:$0x3]  ;;  %v1312_v5 = vsub.f32 0.0, %v1311_v4  ;;  %s2601_s9 = smov [#allocation5]  }
 0x7cf   :  { %v1344_v42 = vrot.slane %v1335_v35, %v2677_v3  ;;  %v1340_v51 = vrot.slane %v1335_v35, %v2674_v2  ;;  %v2491_v2 = vunpack.i.l.bf16 %v2490_v10 }
 0x7d0   :  { %v1313_v6 = vmul.f32 1.442695, %v1312_v5 }
 0x7d1   :  { %2235 = vmatpush3.bf16.msra.mxu0 %v2234_v61  ;;  %1419 = vrot.lane.b32.xlu0 %v1344_v42, %s2598_s26  ;;  %v1395_v33 = vsel %vm376_vm0, %v2491_v2, %v2492_v63 }
 0x7d2   :  { %1417 = vrot.lane.b32.xlu1 %v1340_v51, %s2598_s26  ;;  %2518 = vpow2.f32 %v1313_v6  ;;  %v2208_v48 = vpack.c.bf16 %v1396_v45, %v1395_v33 }
 0x7dc   :  { %v2519_v50 = vpop.eup %2518 }
 0x7dd   :  { %v1315_v16 = vadd.f32 1.0, %v2519_v50  ;;  %v2600_v50 = vmov 1983009808  }
 0x7df   :  { %2520 = vlog2.f32 %v1315_v16  ;;  %v1773_v16 = vunpack.c.l.s4 %v2600_v50 }
 0x7e1   :  { %v1774_v2 = vunpack.c.0.s8 %v1773_v16 }
 0x7e9   :  { %v2521_v38 = vpop.eup %2520 }
 0x7ea   :  { %v1317_v13 = vmul.f32 0.6931472, %v2521_v38 }
 0x844   :  { %v1418_v15 = vpop.permute.xlu1 %1417 }
 0x897   :  { %v1585_v3 = vpop.f32.mrb[8].mxu0 }
 0x898   :  { %v1586_v14 = vadd.f32 %v1585_v3, %v3141_v52  ;;  %v2085_v19 = vpop.f32.mrb[9].mxu0  ;;  %v2510_v52 = vpop.permute.xlu0 %2509 }
 0x899   :  { %v2512_v41 = vunpack.i.h.bf16 %v2510_v52  ;;  %v2511_v60 = vunpack.i.l.bf16 %v2510_v52  ;;  %v1777_v19 = vsub.s32 %v1774_v2, %v2671_v1 }
 0x89a   :  { %v1590_v20 = vand.u32 2147483647, %v1586_v14  ;;  %v1120_v22 = vpop.f32.mrb[8].mxu1  ;;  %v1589_v54 = vmax.f32 %v1586_v14, 0.0 }
 0x89b   :  { %v1121_v25 = vadd.f32 %v1120_v22, %v1049_v47  ;;  %v2052_v31 = vpop.f32.mrb[9].mxu1  ;;  %v1399_v61 = vsel %vm376_vm0, %v2511_v60, %v2512_v41  ;;  %v2214_v47 = vpack.c.bf16 %v2517_v36, %v2512_v41 }
 0x89c   :  { %v1591_v28 = vsub.f32 0.0, %v1590_v20  ;;  %v2216_v11 = vpack.c.bf16 %v1400_v0, %v1399_v61  ;;  %v1142_v8 = vpop.permute.xlu0 %1141 }
 0x89d   :  { %v1124_v44 = vmax.f32 %v1121_v25, 0.0 }
 0x89e   :  { %v1592_v57 = vmul.f32 1.442695, %v1591_v28 }
 0x89f   :  { %2062 = vmatmul.mubr.msk.f32.vlgmr.msra.gmra.mrb[10].mxu1 %vm369_vm10, %v1124_v44 }
 0x8a0   :  { %2522 = vpow2.f32 %v1592_v57  ;;  %2205 = vmatpush1.bf16.msra.mxu1 %v2204_v32  ;;  %1491 = vmatprep.mubr.f32.mxu1 %v2577_v9  ;;  %v1310_v9 = vmax.f32 %v3173_v46, 0.0  ;;  %v1420_v10 = vpop.permute.xlu0 %1419 }
 0x8a1   :  { %2207 = vmatprep.subr.bf16.mxu1 %v2206_v56  ;;  %v1421_v3 = vsel %vm376_vm0, %v1418_v15, %v1420_v10 }
 0x8a2   :  { %v1318_v30 = vadd.f32 %v1317_v13, %v1310_v9 }
 0x8a4   :  { %2209 = vmatpush1.bf16.msra.mxu1 %v2208_v48 }
 0x8a5   :  { %2211 = vmatprep.subr.bf16.mxu1 %v2210_v26 }
 0x8a8   :  { %2213 = vmatpush1.bf16.msra.mxu1 %v2212_v39 }
 0x8a9   :  { %2215 = vmatprep.subr.bf16.mxu1 %v2214_v47 }
 0x8aa   :  { %v2523_v21 = vpop.eup %2522 }
 0x8ab   :  { %v1594_v24 = vadd.f32 1.0, %v2523_v21 }
 0x8ac   :  { %2217 = vmatpush1.bf16.msra.mxu1 %v2216_v11 }
 0x8ad   :  { %2524 = vlog2.f32 %v1594_v24 }
 0x8af   :  { %1831 = vmatmul.mubr.msk.f32.vlgmr.msra.gmra.mrb[12].mxu1 %vm372_vm13, %v1318_v30 }
 0x8b7   :  { %v2525_v53 = vpop.eup %2524 }
 0x8b8   :  { %v1596_v58 = vmul.f32 0.6931472, %v2525_v53 }
 0x8ba   :  { %v1597_v7 = vadd.f32 %v1596_v58, %v1589_v54 }
 0x8bc   :  { %2103 = vmatmul.mubr.msk.f32.vlgmr.msra.gmra.mrb[10].mxu0 %vm372_vm13, %v1597_v7 }
 0x972   :  { %v1213_v32 = vpop.f32.mrb[10].mxu1 }
 0x973   :  { %v1214_v35 = vadd.f32 %v1213_v32, %v1142_v8  ;;  %v2063_v42 = vpop.f32.mrb[11].mxu1 }
 0x975   :  { %1757 = vrot.lane.b32.xlu0 %v1214_v35, %s2578_s0  ;;  %v1760_v6 = vrot.slane %v1214_v35, 2 }
 0x982   :  { %v1493_v51 = vpop.f32.mrb[12].mxu1 }
 0x983   :  { %v1495_v43 = vpop.f32.mrb[13].mxu1  ;;  %v1494_v12 = vadd.f32 %v1493_v51, %v1421_v3 }
 0x984   :  { %v1496_v63 = vadd.f32 %v1495_v43, %v1420_v10 }
 0x98f   :  { %v1748_v46 = vpop.f32.mrb[10].mxu0 }
 0x990   :  { %v1749_v4 = vadd.f32 %v3087_v27, %v1748_v46  ;;  %v2104_v5 = vpop.f32.mrb[11].mxu0 }
 0x992   :  { %1753 = vrot.lane.b32.xlu1 %v1749_v4, %s2596_s23 }
 0x996   :  { %1761 = vrot.lane.b32.xlu1 %v1760_v6, %s2576_s24  ;;  %s1795_s24 = sshll.u32 %s2601_s9, 4  ;;  %s1796_s24 = int_to_ptr.vmem [resolvable:$true] %s1795_s24 }
 0x997   :  { %s2548_s0 = scalar_lea.vmem %s1796_s24, 96  ;;  %p2553_p9 = scmp.lt.s32.totalorder %s1796_s24, %s1796_s24 }
 0x998   :  { %p2549_p8 = scmp.ne.s32.totalorder %s1796_s24, %s2548_s0  ;;  %p2554_p10 = scmp.lt.s32.totalorder %s2548_s0, %s2548_s0 }
 0x99a   :  { %p2555_p11 = por %p2554_p10, %p2553_p9 }
 0x99c   :  { %p2556_p12 = pnand %p2555_p11, %p2549_p8 }
 0x9e7   :  { %v1758_v27 = vpop.permute.xlu0 %1757 }
 0xa04   :  { %v1754_v17 = vpop.permute.xlu1 %1753 }
 0xa05   :  { %v1764_v18 = vsel %vm372_vm13, %v1496_v63, %v1754_v17  ;;  %v1765_v23 = vsel %vm82_vm5, %v1754_v17, %v1758_v27 }
 0xa06   :  { %v1771_v14 = vcombine.low %v1494_v12, %v1764_v18 }
 0xa08   :  { %v1762_v20 = vpop.permute.xlu1 %1761  ;;  %v1778_v31 = vrot.slane %v1771_v14, %v1777_v19 }
 0xa09   :  { %v1766_v22 = vsel %vm369_vm10, %v1765_v23, %v1762_v20 }
 0xa0a   :  { %v1767_v25 = vsel %vm252_vm12, %v1766_v22, 0.0 }
 0xa0b   :  { %v1785_v33 = vrot.slane %v1767_v25, %v1777_v19 }
 0xa0d   :  { %v1786_v45 = vcombine.low %v1778_v31, %v1785_v33 }
 0xa0f   :  { %1788 = vst [vmem:[#allocation5] sm:$0x3f] %v1786_v45 }
 0xa10   :  { %2559 = shalt.err (!%p2556_p12)
}
 0xa11   :  { %s2560_s17 = scalar_lea.hbm %s3220_s10, 96 }
 0xa12   :  { %p2561_p13 = scmp.ne.s32.totalorder %s3220_s10, %s2560_s17  ;;  %p2564_p0 = scmp.lt.u32.totalorder %s2560_s17, %s3220_s10 }
 0xa14   :  { %p2566_p1 = pnand %p2564_p0, %p2561_p13 }
 0xa16   :  { %2569 = shalt.err (!%p2566_p1)
}
 0xa17   :  { %1798 = dma.vmem_to_hbm [thread:$0]  %s1796_s24, 96, %s3220_s10, [#allocation4]  }
 0xa18   :  { %2572 = dma.done.wait [#allocation4], 96  }
 0xa19   :  { %2573 = vsyncadd [#allocation4], 4294967200 }
 0xa1a   :  { %1802 = vsyncpa [#allocation3], 1 }
 0xa1b   :  { %1803 = vsyncpa [#allocation4], 1 }

</bundles_post_ra>
